<compile_context>
chip_gen: v7x
topology: tpu7x:2x2x1
jax: 0.10.0
libtpu: 0.0.40
codegen_flags: <defaults>
</compile_context>

<pallas_src>
import math
import numpy as np
import jax
import jax.numpy as jnp
from jax.experimental import pallas as pl
from jax.experimental.pallas import tpu as pltpu


# ----------------------------------------------------------------------------
# Fused Pallas kernel: SA shared-MLP + max-pool over nsample + proposal head.
# ----------------------------------------------------------------------------
def _fused_sa_head_kernel(gf_ref, gx_ref,
                          w1f, w1x, b1, w2, b2, w3, b3,
                          hw1, hb1, hw2, hb2, hw3, hb3,
                          feat_ref, prop_ref):
    """gf_ref: (1, TP*S, Cfeat) bf16 grouped features
       gx_ref: (1, TP*S, 8)     bf16 grouped xyz (padded 3->8)
       w*:     bf16 weights (BN scale pre-folded), b*: f32 (1, C) biases
       feat_ref: (1, TP, 128) f32   aggregated (max-pooled) features
       prop_ref: (1, TP, PADC) f32  proposal head output (lane-dense, padded)
    """
    R = gf_ref.shape[1]              # TP * S rows in this tile
    TP = feat_ref.shape[1]
    S = R // TP

    gf = gf_ref[...].reshape(R, gf_ref.shape[2])
    gx = gx_ref[...].reshape(R, gx_ref.shape[2])

    # layer 1: split contraction (big lane-aligned feat matmul + tiny xyz matmul)
    h = jnp.dot(gf, w1f[...], preferred_element_type=jnp.float32)
    h = h + jnp.dot(gx, w1x[...], preferred_element_type=jnp.float32)
    h = jnp.maximum(h + b1[...], 0.0)                 # f32 VPU math (v5e-safe)
    # layer 2
    h = jnp.dot(h.astype(jnp.bfloat16), w2[...], preferred_element_type=jnp.float32)
    h = jnp.maximum(h + b2[...], 0.0)
    # layer 3
    h = jnp.dot(h.astype(jnp.bfloat16), w3[...], preferred_element_type=jnp.float32)
    h = jnp.maximum(h + b3[...], 0.0)

    # max-pool over the nsample axis (S multiple of 8 -> tile-preserving reshape)
    f = jnp.max(h.reshape(TP, S, h.shape[-1]), axis=1)        # (TP, 128) f32
    feat_ref[...] = f[None]

    # proposal head (three small matmuls fused in; weights live in VMEM)
    p = jnp.dot(f.astype(jnp.bfloat16), hw1[...], preferred_element_type=jnp.float32)
    p = jnp.maximum(p + hb1[...], 0.0)
    p = jnp.dot(p.astype(jnp.bfloat16), hw2[...], preferred_element_type=jnp.float32)
    p = jnp.maximum(p + hb2[...], 0.0)
    p = jnp.dot(p.astype(jnp.bfloat16), hw3[...], preferred_element_type=jnp.float32) + hb3[...]
    prop_ref[...] = p[None]


def _pick_tp(P):
    """Largest P-tile (divisor of P) so TP*S gives big MXU M; 64 first (S=16 -> 1024 rows)."""
    for tp in (64, 128, 32, 16, 8):
        if tp <= P and P % tp == 0:
            return tp
    return P


def sa_and_proposal(grouped_feat, grouped_xyz, params):
    """grouped_feat: (B, P, S, Cfeat) f32; grouped_xyz: (B, P, S, 3) f32
       -> (features (B,P,128) f32, proposals_padded (B,P,PADC) f32)"""
    B, P, S, C = grouped_feat.shape
    TP = _pick_tp(P)
    R = TP * S
    PADC = params["hw3"].shape[1]

    gf = grouped_feat.reshape(B, P * S, C).astype(jnp.bfloat16)
    gx = jnp.pad(grouped_xyz, ((0, 0), (0, 0), (0, 0), (0, 8 - grouped_xyz.shape[-1])))
    gx = gx.reshape(B, P * S, 8).astype(jnp.bfloat16)

    names = ["w1f", "w1x", "b1", "w2", "b2", "w3", "b3",
             "hw1", "hb1", "hw2", "hb2", "hw3", "hb3"]
    in_specs = [
        pl.BlockSpec((1, R, C), lambda b, p: (b, p, 0)),
        pl.BlockSpec((1, R, 8), lambda b, p: (b, p, 0)),
    ]
    args = [gf, gx]
    for n in names:
        a = params[n]
        in_specs.append(pl.BlockSpec(a.shape, lambda b, p: (0, 0)))
        args.append(a)

    feat, prop = pl.pallas_call(
        _fused_sa_head_kernel,
        out_shape=(jax.ShapeDtypeStruct((B, P, 128), jnp.float32),
                   jax.ShapeDtypeStruct((B, P, PADC), jnp.float32)),
        grid=(B, P // TP),
        in_specs=in_specs,
        out_specs=(pl.BlockSpec((1, TP, 128), lambda b, p: (b, p, 0)),
                   pl.BlockSpec((1, TP, PADC), lambda b, p: (b, p, 0))),
        compiler_params=pltpu.CompilerParams(
            dimension_semantics=("parallel", "parallel")),
    )(*args)
    return feat, prop


# ----------------------------------------------------------------------------
# Plain-JAX glue: FPS, ball query, grouping (data-dependent gathers)
# ----------------------------------------------------------------------------
# TODO(synk): FPS / ball-query are data-dependent gathers kept in plain JAX
# (no clean BlockSpec expression); only the MLP/matmul hot path is in Pallas.
def farthest_point_sample(xyz, npoint):
    B, N, _ = xyz.shape

    def body(i, state):
        dist, idxs, farthest = state
        centroid = jnp.take_along_axis(xyz, farthest[:, None, None], axis=1)  # (B,1,3)
        d = jnp.sum((xyz - centroid) ** 2, axis=-1)                            # (B,N)
        dist = jnp.minimum(dist, d)
        idxs = idxs.at[:, i].set(farthest)
        farthest = jnp.argmax(dist, axis=-1).astype(jnp.int32)
        return dist, idxs, farthest

    dist0 = jnp.full((B, N), 1e10, jnp.float32)
    idxs0 = jnp.zeros((B, npoint), jnp.int32)
    far0 = jnp.zeros((B,), jnp.int32)
    _, idxs, _ = jax.lax.fori_loop(0, npoint, body, (dist0, idxs0, far0))
    return idxs


def ball_query(xyz, new_xyz, radius, nsample):
    """First `nsample` in-radius points in original index order; empty slots
    duplicate the first in-ball point (or index 0 if the ball is empty)."""
    B, N, _ = xyz.shape
    d2 = jnp.sum((new_xyz[:, :, None, :] - xyz[:, None, :, :]) ** 2, axis=-1)  # (B,P,N)
    within = d2 < (radius * radius)
    ar = jnp.arange(N, dtype=jnp.int32)
    # rank in-radius points by ascending index via top_k of (N-1-idx); O(N*k) not a full sort
    key = jnp.where(within, (N - 1) - ar[None, None, :], -1)
    vals, _ = jax.lax.top_k(key, nsample)                  # descending
    idx = (N - 1) - vals                                   # ascending index; empty -> N
    first = idx[:, :, :1]
    idx = jnp.where(idx == N, first, idx)                  # duplicate first in-ball point
    idx = jnp.where(idx == N, 0, idx)                      # empty ball -> index 0
    return idx.astype(jnp.int32)


def gather_points(x, idx):
    """x: (B, N, C), idx: (B, P) or (B, P, S) -> gathered along axis 1."""
    B = x.shape[0]
    C = x.shape[-1]
    if idx.ndim == 2:
        return jnp.take_along_axis(x, idx[:, :, None].astype(jnp.int32), axis=1)
    P, S = idx.shape[1], idx.shape[2]
    flat = idx.reshape(B, P * S)[:, :, None].astype(jnp.int32)
    return jnp.take_along_axis(x, flat, axis=1).reshape(B, P, S, C)


# ----------------------------------------------------------------------------
# Parameter construction (deterministic, synthetic). BN eval-mode scale is
# folded into the conv weight columns; only the bias survives.
# ----------------------------------------------------------------------------
def _conv_w(key, cin, cout):
    return jax.random.normal(key, (cin, cout), jnp.float32) / math.sqrt(cin)


def _bn_fold(key, c, eps=1e-5):
    kg, kb = jax.random.split(key)
    gamma = jax.random.uniform(kg, (1, c), jnp.float32, 0.5, 1.5)
    beta = 0.1 * jax.random.normal(kb, (1, c), jnp.float32)
    running_mean = jnp.zeros((1, c), jnp.float32)
    running_var = jnp.ones((1, c), jnp.float32)
    scale = gamma / jnp.sqrt(running_var + eps)
    bias = beta - running_mean * scale
    return scale, bias


class ProposalModuleJAX:
    def __init__(self, num_class, num_heading_bin, num_size_cluster,
                 mean_size_arr, num_proposal, sampling, seed_feat_dim=256,
                 key=None):
        self.num_class = num_class
        self.num_heading_bin = num_heading_bin
        self.num_size_cluster = num_size_cluster
        self.mean_size_arr = jnp.asarray(mean_size_arr, jnp.float32)
        self.num_proposal = num_proposal
        self.sampling = sampling
        self.seed_feat_dim = seed_feat_dim
        self.radius = 0.3
        self.nsample = 16
        dimen = 128
        out_ch = 2 + 3 + num_heading_bin * 2 + num_size_cluster * 4 + num_class
        self.out_ch = out_ch
        padc = max(128, ((out_ch + 127) // 128) * 128)   # lane-dense head output

        key = jax.random.PRNGKey(0) if key is None else key
        ks = jax.random.split(key, 16)

        p = {}
        # vote_aggregation shared MLP: [seed_feat_dim+3 -> 128 -> 128 -> 128]
        # (use_xyz=True) -- xyz rows handled as a separate tiny matmul.
        s1, b1 = _bn_fold(ks[1], 128)
        w1x = _conv_w(ks[12], 3, 128) * s1                         # xyz part, BN folded
        w1f = _conv_w(ks[0], seed_feat_dim, 128) * s1              # feature part, BN folded
        p["w1f"] = w1f.astype(jnp.bfloat16)
        p["w1x"] = jnp.pad(w1x, ((0, 5), (0, 0))).astype(jnp.bfloat16)  # pad 3->8 rows
        p["b1"] = b1
        s2, b2 = _bn_fold(ks[3], 128)
        p["w2"] = (_conv_w(ks[2], 128, 128) * s2).astype(jnp.bfloat16)
        p["b2"] = b2
        s3, b3 = _bn_fold(ks[5], 128)
        p["w3"] = (_conv_w(ks[4], 128, 128) * s3).astype(jnp.bfloat16)
        p["b3"] = b3

        # proposal head
        hs1, hb1 = _bn_fold(ks[7], dimen)
        p["hw1"] = (_conv_w(ks[6], dimen, dimen) * hs1).astype(jnp.bfloat16)
        p["hb1"] = hb1
        hs2, hb2 = _bn_fold(ks[9], dimen)
        p["hw2"] = (_conv_w(ks[8], dimen, dimen) * hs2).astype(jnp.bfloat16)
        p["hb2"] = hb2
        hw3 = _conv_w(ks[10], dimen, out_ch)
        hb3 = 0.01 * jax.random.normal(ks[11], (1, out_ch), jnp.float32)
        p["hw3"] = jnp.pad(hw3, ((0, 0), (0, padc - out_ch))).astype(jnp.bfloat16)
        p["hb3"] = jnp.pad(hb3, ((0, 0), (0, padc - out_ch)))
        self.params = p

    # PointnetSAModuleVotes(npoint, radius=0.3, nsample=16, mlp=[C,128,128,128],
    #                       use_xyz=True, normalize_xyz=True)  fused with the head.
    def forward(self, xyz, features, data_dict):
        # xyz: (B, K, 3); features: (B, C, K)  (PyTorch NCW layout)
        feat_nlc = jnp.transpose(features, (0, 2, 1))                  # (B, K, C)
        fps_inds = farthest_point_sample(xyz, self.num_proposal)       # (B, P)
        new_xyz = gather_points(xyz, fps_inds)                         # (B, P, 3)
        idx = ball_query(xyz, new_xyz, self.radius, self.nsample)      # (B, P, S)
        grouped_xyz = gather_points(xyz, idx) - new_xyz[:, :, None, :]
        grouped_xyz = grouped_xyz / self.radius                        # normalize_xyz
        grouped_feat = gather_points(feat_nlc, idx)                    # (B, P, S, C)

        new_features, prop_pad = sa_and_proposal(grouped_feat, grouped_xyz, self.params)

        data_dict["aggregated_vote_xyz"] = new_xyz
        data_dict["aggregated_vote_features"] = new_features           # (B, P, 128)
        data_dict["aggregated_vote_inds"] = fps_inds

        net = prop_pad[:, :, :self.out_ch]                             # drop lane padding
        data_dict["generated_proposals"] = net   # channels-last (PyTorch: (B,out_ch,P))
        data_dict = self.decode_scores(net, data_dict)
        return data_dict

    def decode_scores(self, net_t, data_dict):
        # net_t already channels-last == PyTorch's net.transpose(2,1)
        NH, NS = self.num_heading_bin, self.num_size_cluster
        B, P, _ = net_t.shape
        data_dict["objectness_scores"] = net_t[:, :, 0:2]
        data_dict["center"] = data_dict["aggregated_vote_xyz"] + net_t[:, :, 2:5]
        data_dict["heading_scores"] = net_t[:, :, 5:5 + NH]
        hrn = net_t[:, :, 5 + NH:5 + 2 * NH]
        data_dict["heading_residuals_normalized"] = hrn
        data_dict["heading_residuals"] = hrn * (np.pi / NH)
        data_dict["size_scores"] = net_t[:, :, 5 + 2 * NH:5 + 2 * NH + NS]
        srn = net_t[:, :, 5 + 2 * NH + NS:5 + 2 * NH + 4 * NS].reshape(B, P, NS, 3)
        data_dict["size_residuals_normalized"] = srn
        data_dict["size_residuals"] = srn * self.mean_size_arr[None, None, :, :]
        data_dict["sem_cls_scores"] = net_t[:, :, 5 + 2 * NH + 4 * NS:]
        return data_dict


# ----------------------------------------------------------------------------
if __name__ == "__main__":
    B, K = 2, 64
    seed_feat_dim = 32
    num_class, NH, NS = 4, 4, 4
    num_proposal = 16
    mean_size_arr = np.linspace(0.5, 2.0, NS * 3, dtype=np.float32).reshape(NS, 3)

    key = jax.random.PRNGKey(0)
    k_param, k_xyz, k_feat = jax.random.split(key, 3)

    module = ProposalModuleJAX(
        num_class=num_class, num_heading_bin=NH, num_size_cluster=NS,
        mean_size_arr=mean_size_arr, num_proposal=num_proposal,
        sampling="vote_fps", seed_feat_dim=seed_feat_dim, key=k_param)

    xyz = jax.random.uniform(k_xyz, (B, K, 3), jnp.float32)                   # (B, K, 3)
    features = jax.random.normal(k_feat, (B, seed_feat_dim, K), jnp.float32)  # (B, C, K)

    data_dict = module.forward(xyz, features, {})
    jax.block_until_ready(data_dict["sem_cls_scores"])
    jax.block_until_ready(data_dict["center"])
    jax.block_until_ready(data_dict["aggregated_vote_features"])

    # light sanity checks on shapes implied by the PyTorch forward
    assert data_dict["objectness_scores"].shape == (B, num_proposal, 2)
    assert data_dict["center"].shape == (B, num_proposal, 3)
    assert data_dict["size_residuals"].shape == (B, num_proposal, NS, 3)
    assert data_dict["sem_cls_scores"].shape == (B, num_proposal, num_class)
    assert data_dict["aggregated_vote_features"].shape == (B, num_proposal, 128)
    assert bool(jnp.all(jnp.isfinite(data_dict["generated_proposals"])))

    print("KERNEL_OK")
</pallas_src>

<mosaic_0001>
module attributes {stable_mosaic.version = 11 : i64} {
  func.func @_fused_sa_head_kernel(%arg0: i32, %arg1: i32, %arg2: memref<1x256x32xbf16, #tpu.memory_space<vmem>>, %arg3: memref<1x256x8xbf16, #tpu.memory_space<vmem>>, %arg4: memref<32x128xbf16, #tpu.memory_space<vmem>>, %arg5: memref<8x128xbf16, #tpu.memory_space<vmem>>, %arg6: memref<1x128xf32, #tpu.memory_space<vmem>>, %arg7: memref<128x128xbf16, #tpu.memory_space<vmem>>, %arg8: memref<1x128xf32, #tpu.memory_space<vmem>>, %arg9: memref<128x128xbf16, #tpu.memory_space<vmem>>, %arg10: memref<1x128xf32, #tpu.memory_space<vmem>>, %arg11: memref<128x128xbf16, #tpu.memory_space<vmem>>, %arg12: memref<1x128xf32, #tpu.memory_space<vmem>>, %arg13: memref<128x128xbf16, #tpu.memory_space<vmem>>, %arg14: memref<1x128xf32, #tpu.memory_space<vmem>>, %arg15: memref<128x128xbf16, #tpu.memory_space<vmem>>, %arg16: memref<1x128xf32, #tpu.memory_space<vmem>>, %arg17: memref<1x16x128xf32, #tpu.memory_space<vmem>>, %arg18: memref<1x16x128xf32, #tpu.memory_space<vmem>>) attributes {dimension_semantics = [#tpu.dimension_semantics<parallel>, #tpu.dimension_semantics<parallel>], iteration_bounds = array<i64: 2, 1>, scalar_prefetch = 0 : i64, scratch_operands = 0 : i64, tpu.core_type = #tpu.core_type<tc>, window_params = [{transform_indices = @transform_0, window_bounds = array<i64: 1, 256, 32>}, {transform_indices = @transform_1, window_bounds = array<i64: 1, 256, 8>}, {pipeline_mode = #tpu.pipeline_mode<synchronous>, transform_indices = @transform_2, window_bounds = array<i64: 32, 128>}, {pipeline_mode = #tpu.pipeline_mode<synchronous>, transform_indices = @transform_3, window_bounds = array<i64: 8, 128>}, {pipeline_mode = #tpu.pipeline_mode<synchronous>, transform_indices = @transform_4, window_bounds = array<i64: 1, 128>}, {pipeline_mode = #tpu.pipeline_mode<synchronous>, transform_indices = @transform_5, window_bounds = array<i64: 128, 128>}, {pipeline_mode = #tpu.pipeline_mode<synchronous>, transform_indices = @transform_6, window_bounds = array<i64: 1, 128>}, {pipeline_mode = #tpu.pipeline_mode<synchronous>, transform_indices = @transform_7, window_bounds = array<i64: 128, 128>}, {pipeline_mode = #tpu.pipeline_mode<synchronous>, transform_indices = @transform_8, window_bounds = array<i64: 1, 128>}, {pipeline_mode = #tpu.pipeline_mode<synchronous>, transform_indices = @transform_9, window_bounds = array<i64: 128, 128>}, {pipeline_mode = #tpu.pipeline_mode<synchronous>, transform_indices = @transform_10, window_bounds = array<i64: 1, 128>}, {pipeline_mode = #tpu.pipeline_mode<synchronous>, transform_indices = @transform_11, window_bounds = array<i64: 128, 128>}, {pipeline_mode = #tpu.pipeline_mode<synchronous>, transform_indices = @transform_12, window_bounds = array<i64: 1, 128>}, {pipeline_mode = #tpu.pipeline_mode<synchronous>, transform_indices = @transform_13, window_bounds = array<i64: 128, 128>}, {pipeline_mode = #tpu.pipeline_mode<synchronous>, transform_indices = @transform_14, window_bounds = array<i64: 1, 128>}, {transform_indices = @transform_15, window_bounds = array<i64: 1, 16, 128>}, {transform_indices = @transform_16, window_bounds = array<i64: 1, 16, 128>}]} {
    %c0 = arith.constant 0 : index
    %c0_0 = arith.constant 0 : index
    %c0_1 = arith.constant 0 : index
    %0 = vector.load %arg2[%c0, %c0_0, %c0_1] : memref<1x256x32xbf16, #tpu.memory_space<vmem>>, vector<1x256x32xbf16>
    %1 = vector.shape_cast %0 : vector<1x256x32xbf16> to vector<256x32xbf16>
    %c0_2 = arith.constant 0 : index
    %c0_3 = arith.constant 0 : index
    %c0_4 = arith.constant 0 : index
    %2 = vector.load %arg3[%c0_2, %c0_3, %c0_4] : memref<1x256x8xbf16, #tpu.memory_space<vmem>>, vector<1x256x8xbf16>
    %3 = vector.shape_cast %2 : vector<1x256x8xbf16> to vector<256x8xbf16>
    %c0_5 = arith.constant 0 : index
    %c0_6 = arith.constant 0 : index
    %4 = vector.load %arg4[%c0_5, %c0_6] : memref<32x128xbf16, #tpu.memory_space<vmem>>, vector<32x128xbf16>
    %cst = arith.constant dense<0.000000e+00> : vector<256x128xf32>
    %5 = tpu.matmul %1, %4, %cst {dimension_numbers = #tpu.dot_dimension_numbers<[1], [0], [0], [1], [0, 0, 1, 1], [], []>} : vector<256x32xbf16>, vector<32x128xbf16>, vector<256x128xf32> -> vector<256x128xf32>
    %c0_7 = arith.constant 0 : index
    %c0_8 = arith.constant 0 : index
    %6 = vector.load %arg5[%c0_7, %c0_8] : memref<8x128xbf16, #tpu.memory_space<vmem>>, vector<8x128xbf16>
    %cst_9 = arith.constant dense<0.000000e+00> : vector<256x128xf32>
    %7 = tpu.matmul %3, %6, %cst_9 {dimension_numbers = #tpu.dot_dimension_numbers<[1], [0], [0], [1], [0, 0, 1, 1], [], []>} : vector<256x8xbf16>, vector<8x128xbf16>, vector<256x128xf32> -> vector<256x128xf32>
    %8 = arith.addf %5, %7 : vector<256x128xf32>
    %c0_10 = arith.constant 0 : index
    %c0_11 = arith.constant 0 : index
    %9 = vector.load %arg6[%c0_10, %c0_11] : memref<1x128xf32, #tpu.memory_space<vmem>>, vector<1x128xf32>
    %10 = vector.broadcast %9 : vector<1x128xf32> to vector<256x128xf32>
    %11 = arith.addf %8, %10 : vector<256x128xf32>
    %cst_12 = arith.constant 0.000000e+00 : f32
    %12 = vector.broadcast %cst_12 : f32 to vector<256x128xf32>
    %13 = arith.maximumf %11, %12 : vector<256x128xf32>
    %14 = arith.truncf %13 : vector<256x128xf32> to vector<256x128xbf16>
    %c0_13 = arith.constant 0 : index
    %c0_14 = arith.constant 0 : index
    %15 = vector.load %arg7[%c0_13, %c0_14] : memref<128x128xbf16, #tpu.memory_space<vmem>>, vector<128x128xbf16>
    %cst_15 = arith.constant dense<0.000000e+00> : vector<256x128xf32>
    %16 = tpu.matmul %14, %15, %cst_15 {dimension_numbers = #tpu.dot_dimension_numbers<[1], [0], [0], [1], [0, 0, 1, 1], [], []>} : vector<256x128xbf16>, vector<128x128xbf16>, vector<256x128xf32> -> vector<256x128xf32>
    %c0_16 = arith.constant 0 : index
    %c0_17 = arith.constant 0 : index
    %17 = vector.load %arg8[%c0_16, %c0_17] : memref<1x128xf32, #tpu.memory_space<vmem>>, vector<1x128xf32>
    %18 = vector.broadcast %17 : vector<1x128xf32> to vector<256x128xf32>
    %19 = arith.addf %16, %18 : vector<256x128xf32>
    %cst_18 = arith.constant 0.000000e+00 : f32
    %20 = vector.broadcast %cst_18 : f32 to vector<256x128xf32>
    %21 = arith.maximumf %19, %20 : vector<256x128xf32>
    %22 = arith.truncf %21 : vector<256x128xf32> to vector<256x128xbf16>
    %c0_19 = arith.constant 0 : index
    %c0_20 = arith.constant 0 : index
    %23 = vector.load %arg9[%c0_19, %c0_20] : memref<128x128xbf16, #tpu.memory_space<vmem>>, vector<128x128xbf16>
    %cst_21 = arith.constant dense<0.000000e+00> : vector<256x128xf32>
    %24 = tpu.matmul %22, %23, %cst_21 {dimension_numbers = #tpu.dot_dimension_numbers<[1], [0], [0], [1], [0, 0, 1, 1], [], []>} : vector<256x128xbf16>, vector<128x128xbf16>, vector<256x128xf32> -> vector<256x128xf32>
    %c0_22 = arith.constant 0 : index
    %c0_23 = arith.constant 0 : index
    %25 = vector.load %arg10[%c0_22, %c0_23] : memref<1x128xf32, #tpu.memory_space<vmem>>, vector<1x128xf32>
    %26 = vector.broadcast %25 : vector<1x128xf32> to vector<256x128xf32>
    %27 = arith.addf %24, %26 : vector<256x128xf32>
    %cst_24 = arith.constant 0.000000e+00 : f32
    %28 = vector.broadcast %cst_24 : f32 to vector<256x128xf32>
    %29 = arith.maximumf %27, %28 : vector<256x128xf32>
    %30 = vector.shape_cast %29 : vector<256x128xf32> to vector<16x16x128xf32>
    %cst_25 = arith.constant dense<0xFF800000> : vector<16x128xf32>
    %31 = vector.multi_reduction <maximumf>, %30, %cst_25 [1] : vector<16x16x128xf32> to vector<16x128xf32>
    %32 = vector.shape_cast %31 : vector<16x128xf32> to vector<1x16x128xf32>
    %c0_26 = arith.constant 0 : index
    %c0_27 = arith.constant 0 : index
    %c0_28 = arith.constant 0 : index
    %33 = vector.load %arg17[%c0_26, %c0_27, %c0_28] : memref<1x16x128xf32, #tpu.memory_space<vmem>>, vector<1x16x128xf32>
    tpu.vector_store %arg17[%c0_26, %c0_27, %c0_28], %32 {strides = array<i32>} : memref<1x16x128xf32, #tpu.memory_space<vmem>>, vector<1x16x128xf32>,
    %34 = arith.truncf %31 : vector<16x128xf32> to vector<16x128xbf16>
    %c0_29 = arith.constant 0 : index
    %c0_30 = arith.constant 0 : index
    %35 = vector.load %arg11[%c0_29, %c0_30] : memref<128x128xbf16, #tpu.memory_space<vmem>>, vector<128x128xbf16>
    %cst_31 = arith.constant dense<0.000000e+00> : vector<16x128xf32>
    %36 = tpu.matmul %34, %35, %cst_31 {dimension_numbers = #tpu.dot_dimension_numbers<[1], [0], [0], [1], [0, 0, 1, 1], [], []>} : vector<16x128xbf16>, vector<128x128xbf16>, vector<16x128xf32> -> vector<16x128xf32>
    %c0_32 = arith.constant 0 : index
    %c0_33 = arith.constant 0 : index
    %37 = vector.load %arg12[%c0_32, %c0_33] : memref<1x128xf32, #tpu.memory_space<vmem>>, vector<1x128xf32>
    %38 = vector.broadcast %37 : vector<1x128xf32> to vector<16x128xf32>
    %39 = arith.addf %36, %38 : vector<16x128xf32>
    %cst_34 = arith.constant 0.000000e+00 : f32
    %40 = vector.broadcast %cst_34 : f32 to vector<16x128xf32>
    %41 = arith.maximumf %39, %40 : vector<16x128xf32>
    %42 = arith.truncf %41 : vector<16x128xf32> to vector<16x128xbf16>
    %c0_35 = arith.constant 0 : index
    %c0_36 = arith.constant 0 : index
    %43 = vector.load %arg13[%c0_35, %c0_36] : memref<128x128xbf16, #tpu.memory_space<vmem>>, vector<128x128xbf16>
    %cst_37 = arith.constant dense<0.000000e+00> : vector<16x128xf32>
    %44 = tpu.matmul %42, %43, %cst_37 {dimension_numbers = #tpu.dot_dimension_numbers<[1], [0], [0], [1], [0, 0, 1, 1], [], []>} : vector<16x128xbf16>, vector<128x128xbf16>, vector<16x128xf32> -> vector<16x128xf32>
    %c0_38 = arith.constant 0 : index
    %c0_39 = arith.constant 0 : index
    %45 = vector.load %arg14[%c0_38, %c0_39] : memref<1x128xf32, #tpu.memory_space<vmem>>, vector<1x128xf32>
    %46 = vector.broadcast %45 : vector<1x128xf32> to vector<16x128xf32>
    %47 = arith.addf %44, %46 : vector<16x128xf32>
    %cst_40 = arith.constant 0.000000e+00 : f32
    %48 = vector.broadcast %cst_40 : f32 to vector<16x128xf32>
    %49 = arith.maximumf %47, %48 : vector<16x128xf32>
    %50 = arith.truncf %49 : vector<16x128xf32> to vector<16x128xbf16>
    %c0_41 = arith.constant 0 : index
    %c0_42 = arith.constant 0 : index
    %51 = vector.load %arg15[%c0_41, %c0_42] : memref<128x128xbf16, #tpu.memory_space<vmem>>, vector<128x128xbf16>
    %cst_43 = arith.constant dense<0.000000e+00> : vector<16x128xf32>
    %52 = tpu.matmul %50, %51, %cst_43 {dimension_numbers = #tpu.dot_dimension_numbers<[1], [0], [0], [1], [0, 0, 1, 1], [], []>} : vector<16x128xbf16>, vector<128x128xbf16>, vector<16x128xf32> -> vector<16x128xf32>
    %c0_44 = arith.constant 0 : index
    %c0_45 = arith.constant 0 : index
    %53 = vector.load %arg16[%c0_44, %c0_45] : memref<1x128xf32, #tpu.memory_space<vmem>>, vector<1x128xf32>
    %54 = vector.broadcast %53 : vector<1x128xf32> to vector<16x128xf32>
    %55 = arith.addf %52, %54 : vector<16x128xf32>
    %56 = vector.shape_cast %55 : vector<16x128xf32> to vector<1x16x128xf32>
    %c0_46 = arith.constant 0 : index
    %c0_47 = arith.constant 0 : index
    %c0_48 = arith.constant 0 : index
    %57 = vector.load %arg18[%c0_46, %c0_47, %c0_48] : memref<1x16x128xf32, #tpu.memory_space<vmem>>, vector<1x16x128xf32>
    tpu.vector_store %arg18[%c0_46, %c0_47, %c0_48], %56 {strides = array<i32>} : memref<1x16x128xf32, #tpu.memory_space<vmem>>, vector<1x16x128xf32>,
    return
  }
  func.func @transform_0(%arg0: i32, %arg1: i32) -> (i32, i32, i32) {
    %c0_i32 = arith.constant 0 : i32
    %c0_i32_0 = arith.constant 0 : i32
    return %arg0, %arg1, %c0_i32 : i32, i32, i32
  }
  func.func @transform_1(%arg0: i32, %arg1: i32) -> (i32, i32, i32) {
    %c0_i32 = arith.constant 0 : i32
    %c0_i32_0 = arith.constant 0 : i32
    return %arg0, %arg1, %c0_i32 : i32, i32, i32
  }
  func.func @transform_2(%arg0: i32, %arg1: i32) -> (i32, i32) {
    %c0_i32 = arith.constant 0 : i32
    %c0_i32_0 = arith.constant 0 : i32
    %c0_i32_1 = arith.constant 0 : i32
    return %c0_i32, %c0_i32_0 : i32, i32
  }
  func.func @transform_3(%arg0: i32, %arg1: i32) -> (i32, i32) {
    %c0_i32 = arith.constant 0 : i32
    %c0_i32_0 = arith.constant 0 : i32
    %c0_i32_1 = arith.constant 0 : i32
    return %c0_i32, %c0_i32_0 : i32, i32
  }
  func.func @transform_4(%arg0: i32, %arg1: i32) -> (i32, i32) {
    %c0_i32 = arith.constant 0 : i32
    %c0_i32_0 = arith.constant 0 : i32
    %c0_i32_1 = arith.constant 0 : i32
    return %c0_i32, %c0_i32_0 : i32, i32
  }
  func.func @transform_5(%arg0: i32, %arg1: i32) -> (i32, i32) {
    %c0_i32 = arith.constant 0 : i32
    %c0_i32_0 = arith.constant 0 : i32
    %c0_i32_1 = arith.constant 0 : i32
    return %c0_i32, %c0_i32_0 : i32, i32
  }
  func.func @transform_6(%arg0: i32, %arg1: i32) -> (i32, i32) {
    %c0_i32 = arith.constant 0 : i32
    %c0_i32_0 = arith.constant 0 : i32
    %c0_i32_1 = arith.constant 0 : i32
    return %c0_i32, %c0_i32_0 : i32, i32
  }
  func.func @transform_7(%arg0: i32, %arg1: i32) -> (i32, i32) {
    %c0_i32 = arith.constant 0 : i32
    %c0_i32_0 = arith.constant 0 : i32
    %c0_i32_1 = arith.constant 0 : i32
    return %c0_i32, %c0_i32_0 : i32, i32
  }
  func.func @transform_8(%arg0: i32, %arg1: i32) -> (i32, i32) {
    %c0_i32 = arith.constant 0 : i32
    %c0_i32_0 = arith.constant 0 : i32
    %c0_i32_1 = arith.constant 0 : i32
    return %c0_i32, %c0_i32_0 : i32, i32
  }
  func.func @transform_9(%arg0: i32, %arg1: i32) -> (i32, i32) {
    %c0_i32 = arith.constant 0 : i32
    %c0_i32_0 = arith.constant 0 : i32
    %c0_i32_1 = arith.constant 0 : i32
    return %c0_i32, %c0_i32_0 : i32, i32
  }
  func.func @transform_10(%arg0: i32, %arg1: i32) -> (i32, i32) {
    %c0_i32 = arith.constant 0 : i32
    %c0_i32_0 = arith.constant 0 : i32
    %c0_i32_1 = arith.constant 0 : i32
    return %c0_i32, %c0_i32_0 : i32, i32
  }
  func.func @transform_11(%arg0: i32, %arg1: i32) -> (i32, i32) {
    %c0_i32 = arith.constant 0 : i32
    %c0_i32_0 = arith.constant 0 : i32
    %c0_i32_1 = arith.constant 0 : i32
    return %c0_i32, %c0_i32_0 : i32, i32
  }
  func.func @transform_12(%arg0: i32, %arg1: i32) -> (i32, i32) {
    %c0_i32 = arith.constant 0 : i32
    %c0_i32_0 = arith.constant 0 : i32
    %c0_i32_1 = arith.constant 0 : i32
    return %c0_i32, %c0_i32_0 : i32, i32
  }
  func.func @transform_13(%arg0: i32, %arg1: i32) -> (i32, i32) {
    %c0_i32 = arith.constant 0 : i32
    %c0_i32_0 = arith.constant 0 : i32
    %c0_i32_1 = arith.constant 0 : i32
    return %c0_i32, %c0_i32_0 : i32, i32
  }
  func.func @transform_14(%arg0: i32, %arg1: i32) -> (i32, i32) {
    %c0_i32 = arith.constant 0 : i32
    %c0_i32_0 = arith.constant 0 : i32
    %c0_i32_1 = arith.constant 0 : i32
    return %c0_i32, %c0_i32_0 : i32, i32
  }
  func.func @transform_15(%arg0: i32, %arg1: i32) -> (i32, i32, i32) {
    %c0_i32 = arith.constant 0 : i32
    %c0_i32_0 = arith.constant 0 : i32
    return %arg0, %arg1, %c0_i32 : i32, i32, i32
  }
  func.func @transform_16(%arg0: i32, %arg1: i32) -> (i32, i32, i32) {
    %c0_i32 = arith.constant 0 : i32
    %c0_i32_0 = arith.constant 0 : i32
    return %arg0, %arg1, %c0_i32 : i32, i32, i32
  }
}

</mosaic_0001>

<bundles_post_ra>
// kernel: tpu_custom_call.1
= control target key start
LH: loop header
LB: loop body
LE: loop exit
PB: predicated region body
PF: predicated region fallthrough
CT: control target
= control target key end

     0   :  { %s4027_s0 = inlined_call_operand.vmem [shape: bf16[2,256,32], index: 0, kind: input, shape index: {}]   ;;  %s4028_s1 = inlined_call_operand.vmem [shape: bf16[2,256,8], index: 1, kind: input, shape index: {}]   ;;  %s4029_s2 = inlined_call_operand.vmem [shape: bf16[32,128], index: 2, kind: input, shape index: {}]   ;;  %s4030_s3 = inlined_call_operand.vmem [shape: bf16[8,128], index: 3, kind: input, shape index: {}]   ;;  %s4031_s4 = inlined_call_operand.vmem [shape: f32[1,128], index: 4, kind: input, shape index: {}]   ;;  %s4032_s5 = inlined_call_operand.vmem [shape: bf16[128,128], index: 5, kind: input, shape index: {}]   ;;  %s4033_s6 = inlined_call_operand.vmem [shape: f32[1,128], index: 6, kind: input, shape index: {}]   ;;  %s4034_s7 = inlined_call_operand.vmem [shape: bf16[128,128], index: 7, kind: input, shape index: {}]   ;;  %s4035_s8 = inlined_call_operand.vmem [shape: f32[1,128], index: 8, kind: input, shape index: {}]   ;;  %s4036_s9 = inlined_call_operand.vmem [shape: bf16[128,128], index: 9, kind: input, shape index: {}]   ;;  %s4037_s10 = inlined_call_operand.vmem [shape: f32[1,128], index: 10, kind: input, shape index: {}]   ;;  %s4038_s11 = inlined_call_operand.vmem [shape: bf16[128,128], index: 11, kind: input, shape index: {}]   ;;  %s4039_s12 = inlined_call_operand.vmem [shape: f32[1,128], index: 12, kind: input, shape index: {}]   ;;  %s4040_s13 = inlined_call_operand.vmem [shape: bf16[128,128], index: 13, kind: input, shape index: {}]   ;;  %s4041_s14 = inlined_call_operand.vmem [shape: f32[1,128], index: 14, kind: input, shape index: {}]   ;;  %s4042_s15 = inlined_call_operand.hbm [shape: f32[2,16,128], index: 15, kind: output, shape index: {0}]   ;;  %s4043_s16 = inlined_call_operand.hbm [shape: f32[2,16,128], index: 16, kind: output, shape index: {1}]  }
   0x1   :  { %4052 = sst [smem:[#allocation13_spill]] %s4027_s0 }
   0x2   :  { %4053 = sst [smem:[#allocation14_spill]] %s4028_s1 }
   0x3   :  { %4054 = sst [smem:[#allocation15_spill]] %s4030_s3 }
   0x4   :  { %22 = vsyncpa [#allocation3], 0 }
   0x5   :  { %24 = vsyncpa [#allocation3 + $0x1], 0 }
   0x6   :  { %25 = vsyncpa [#allocation5], 0 }
   0x7   :  { %27 = vsyncpa [#allocation5 + $0x1], 0  ;;  %s3475_s21 = smov 0   ;;  %s3477_s22 = smov 0  }
   0x8   :  { %s3479_s23 = smov 0   ;;  %s3481_s24 = smov 0  }
   0x9   :  { %s3483_s25 = smov 0   ;;  %s3485_s26 = smov 0  }
   0xa LB: > { %4055 = sst [smem:[#allocation8_spill]] %s3370_s23  ;;  %s2630_s27 = sadd.s32 4294967295, %s3382_s26   ;;  %s3382_s26 = sphi %s3485_s26, %s33_s26   ;;  %s3378_s25 = sphi %s3483_s25, %s4074_s25   ;;  %s3374_s24 = sphi %s3481_s24, %s4073_s24   ;;  %s3370_s23 = sphi %s3479_s23, %s4077_s23   ;;  %s3366_s22 = sphi %s3477_s22, %s4076_s22   ;;  %s3362_s21 = sphi %s3475_s21, %s4075_s21  }
   0xb   : > { %4056 = sst [smem:[#allocation9_spill]] %s3378_s25  ;;  %s2631_s28 = sadd.s32 4294967294, %s3382_s26  }
   0xc   : > { %s45_s29 = sadd.s32 1, %s3378_s25  ;;  %s383_s30 = sadd.s32 1, %s3370_s23 }
   0xd   : > { %p47_p0 = scmp.ge.s32.totalorder %s45_s29, 2  ;;  %p393_p1 = scmp.ne.s32.totalorder %s3370_s23, %s3366_s22 }
   0xe   : > { %p394_p2 = scmp.eq.s32.totalorder %s2630_s27, 1  ;;  %p399_p3 = scmp.ne.s32.totalorder %s3366_s22, %s3362_s21 }
   0xf   : > { %s4079_s29 = smov (%p47_p0, %s45_s29), 0  ;;  %p400_p5 = scmp.eq.s32.totalorder %s2631_s28, 1 }
  0x10   : > { %4057 = sst [smem:[#allocation10_spill]] %s4079_s29  ;;  %p3515_p4 = por %p394_p2, %p393_p1 }
  0x11   : > { %s378_s17 = ssub.s32 %s3378_s25, %s4079_s29  ;;  %p2634_p6 = scmp.ge.s32.totalorder %s3382_s26, 1 }
  0x12   : > { %p381_p7 = scmp.eq.s32.totalorder %s378_s17, 0  ;;  %p3522_p8 = por %p400_p5, %p399_p3 }
  0x13   : > { %p511_p9 = scmp.lt.s32.totalorder %s3382_s26, 3 }
  0x14   : > { %s4059_s18 = scalar_select %p3522_p8, 1, 0 }
  0x15   : > { %s3528_s19 = scalar_select %p381_p7, %s3370_s23, %s383_s30  }
  0x16   : > { %4060 = sst [smem:[#allocation11_spill]] %s4059_s18  ;;  %p512_p10 = pnand %p2634_p6, %p511_p9 }
  0x17   : > { %4061 = sst [smem:[#allocation12_spill]] %s3528_s19  ;;  %s4062_s3 = sld [smem:[#allocation15_spill]] (!%p512_p10)  ;;  %vm800_vm0 = vcmask (!%p512_p10), 1043456   ;;  %v3199_v1 = vld [vmem:[%s4029_s2] sm:$0xff] (!%p512_p10)   ;;  %v3233_v4 = vld [vmem:[%s4032_s5 + $0x8] sm:$0xff] (!%p512_p10)   ;;  %vm751_vm1 = vcmask (!%p512_p10), 64512  }
  0x18   : > { %515 = sbr.rel (%p512_p10) target bundleno = 1513 (0x5e9), region = 80  ;;  %p580_p11 = scmp.lt.s32.totalorder (!%p512_p10), %s3374_s24, 1  ;;  %v3232_v3 = vld [vmem:[%s4032_s5] sm:$0xff] (!%p512_p10)   ;;  %v3208_v5 = vld [vmem:[%s4029_s2 + $0x8] sm:$0xff] (!%p512_p10)   ;;  %v3234_v7 = vld [vmem:[%s4032_s5 + $0x10] sm:$0xff] (!%p512_p10)   ;;  %vm1057_vm2 = vcmask (!%p512_p10), 261120  }
  0x19   : > { %s4063_s1 = sld [smem:[#allocation14_spill]] (!%p512_p10)  ;;  %2945 = vmatprep.subr.bf16.mxu1 (!%p512_p10), %v3232_v3  ;;  %s4064_s19 = sld [smem:[#allocation13_spill]] (!%p512_p10)  ;;  %v3235_v18 = vld [vmem:[%s4032_s5 + $0x18] sm:$0xff] (!%p512_p10)   ;;  %v3236_v19 = vld [vmem:[%s4032_s5 + $0x20] sm:$0xff] (!%p512_p10)   ;;  %v3237_v20 = vld [vmem:[%s4032_s5 + $0x28] sm:$0xff] (!%p512_p10)   ;;  %vm3385_vm3 = vmmov (!%p512_p10), 0  }
  0x1a   : > { %2946 = vmatpush3.bf16.msra.mxu1 (!%p512_p10), %v3232_v3  ;;  %v3238_v42 = vld [vmem:[%s4032_s5 + $0x30] sm:$0xff] (!%p512_p10)   ;;  %v3239_v43 = vld [vmem:[%s4032_s5 + $0x38] sm:$0xff] (!%p512_p10)   ;;  %v3240_v44 = vld [vmem:[%s4034_s7] sm:$0xff] (!%p512_p10)   ;;  %vm2026_vm4 = vcmask (!%p512_p10), 1041409   ;;  %vm2028_vm5 = vcmask (!%p512_p10), 1042434   ;;  %vm2030_vm6 = vcmask (!%p512_p10), 1043459  }
  0x1b   : > { %2947 = vmatprep.subr.bf16.mxu1 (!%p512_p10), %v3233_v4  ;;  %v3648_v45 = vld [vmem:[%s4031_s4] ss:$0 sm:$0xff] (!%p512_p10)  ;;  %v3241_v63 = vld [vmem:[%s4034_s7 + $0x8] sm:$0xff] (!%p512_p10)   ;;  %vm2032_vm7 = vcmask (!%p512_p10), 1044484   ;;  %vm2034_vm8 = vcmask (!%p512_p10), 1045509   ;;  %s3839_s23 = sand.u32 (!%p512_p10), 1, %s3366_s22  }
  0x1c   : > { %vm2036_vm9 = vcmask (!%p512_p10), 1046534   ;;  %vm2038_vm10 = vcmask (!%p512_p10), 1047559   ;;  %s4048_s18 = sshll.u32 (!%p512_p10), %s3839_s23, 4 }
  0x1d   : > { %v670_v0 = vld [vmem:[%s4062_s3] sm:$0xf] (!%p512_p10)  ;;  %s3386_s3 = smov (!%p512_p10), [#allocation2]  }
  0x1e   : > { %3133 = vmatprep.subr.msk.bf16.mxu0 (!%p512_p10), %vm800_vm0, %v670_v0  ;;  %v802_v2 = vsel (!%p512_p10), %vm800_vm0, %v670_v0, 0  ;;  %2948 = vmatpush3.bf16.msra.mxu1 (!%p512_p10), %v3233_v4 }
  0x1f   : > { %2876 = vmatpush3.bf16.msra.mxu0 %v802_v2  ;;  %s3538_s17 = scalar_select %p580_p11, %s3374_s24, 1  ;;  %2949 = vmatprep.subr.bf16.mxu1 %v3234_v7 }
  0x20   : > { %2909 = vmatprep.subr.bf16.mxu0 %v3199_v1 }
  0x21   : > { %s2761_s20 = sshll.u32 %s3538_s17, 7 }
  0x22   : > { %s3550_s29 = scalar_lea.vmem %s4063_s1, %s2761_s20  ;;  %2950 = vmatpush3.bf16.msra.mxu1 %v3234_v7  ;;  %s3571_s17 = scalar_lea.vmem %s4064_s19, %s2761_s20  ;;  %v3242_v7 = vld [vmem:[%s4034_s7 + $0x10] sm:$0xff]  }
  0x23   : > { %v3198_v6 = vld [vmem:[%s3550_s29] sm:$0xff]   ;;  %v3200_v8 = vld [vmem:[%s3550_s29 + $0x8] sm:$0xff]   ;;  %v3201_v9 = vld [vmem:[%s3550_s29 + $0x10] sm:$0xff]   ;;  %2951 = vmatprep.subr.bf16.mxu1 %v3235_v18  ;;  %s3853_s19 = scalar_lea.vmem [#allocation2], %s4048_s18 }
  0x24   : > { %2877 = vmatprep.mubr.msk.bf16.mxu0 %vm751_vm1, %v3198_v6  ;;  %v3202_v10 = vld [vmem:[%s3550_s29 + $0x18] sm:$0xff]   ;;  %v3203_v11 = vld [vmem:[%s3550_s29 + $0x20] sm:$0xff]   ;;  %v3204_v12 = vld [vmem:[%s3550_s29 + $0x28] sm:$0xff]   ;;  %s2480_s25 = sshll.u32 %s3853_s19, 4  ;;  %s3927_s25 = int_to_ptr.vmem [resolvable:$true] %s2480_s25 }
  0x25   : > { %2878 = vmatmul.mubr.msk.bf16.vlgmr.msra.gmra.mrb[0].mxu0 %vm751_vm1, %v3200_v8  ;;  %v3205_v13 = vld [vmem:[%s3550_s29 + $0x30] sm:$0xff]   ;;  %v3206_v14 = vld [vmem:[%s3550_s29 + $0x38] sm:$0xff]   ;;  %v3207_v15 = vld [vmem:[%s3550_s29 + $0x40] sm:$0xff]   ;;  %s3272_s28 = scalar_lea.vmem %s3927_s25, 256 }
  0x26   : > { %2910 = vmatpush3.bf16.msra.mxu0 %v3199_v1  ;;  %2881 = vmatprep.mubr.msk.bf16.mxu0 %vm751_vm1, %v3201_v9  ;;  %v3209_v16 = vld [vmem:[%s3550_s29 + $0x48] sm:$0xff]   ;;  %v3210_v17 = vld [vmem:[%s3550_s29 + $0x50] sm:$0xff]   ;;  %v3211_v21 = vld [vmem:[%s3550_s29 + $0x58] sm:$0xff]   ;;  %p3273_p12 = scmp.ne.s32.totalorder %s3927_s25, %s3272_s28 }
  0x27   : > { %2911 = vmatprep.subr.bf16.mxu0 %v3208_v5  ;;  %2952 = vmatpush3.bf16.msra.mxu1 %v3235_v18  ;;  %v3212_v22 = vld [vmem:[%s3550_s29 + $0x60] sm:$0xff]   ;;  %v3213_v23 = vld [vmem:[%s3550_s29 + $0x68] sm:$0xff]   ;;  %v3214_v24 = vld [vmem:[%s3550_s29 + $0x70] sm:$0xff]  }
  0x28   : > { %2953 = vmatprep.subr.bf16.mxu1 %v3236_v19  ;;  %v3215_v25 = vld [vmem:[%s3550_s29 + $0x78] sm:$0xff]   ;;  %v3216_v26 = vld [vmem:[%s3571_s17] sm:$0xff]   ;;  %v3217_v27 = vld [vmem:[%s3571_s17 + $0x8] sm:$0xff]   ;;  %s4049_s29 = sshll.u32 %s3374_s24, 8  ;;  %p3274_p13 = pnand %p3273_p12, %p3515_p4 }
  0x29   : > { %v3218_v28 = vld [vmem:[%s3571_s17 + $0x10] sm:$0xff]   ;;  %v3219_v29 = vld [vmem:[%s3571_s17 + $0x18] sm:$0xff]   ;;  %v3220_v30 = vld [vmem:[%s3571_s17 + $0x20] sm:$0xff]  }
  0x2a   : > { %2912 = vmatpush3.bf16.msra.mxu0 %v3208_v5  ;;  %v3221_v31 = vld [vmem:[%s3571_s17 + $0x28] sm:$0xff]   ;;  %v3222_v32 = vld [vmem:[%s3571_s17 + $0x30] sm:$0xff]   ;;  %v3223_v33 = vld [vmem:[%s3571_s17 + $0x38] sm:$0xff]   ;;  %p3275_p0 = pneg %p3274_p13 }
  0x2b   : > { %2954 = vmatpush3.bf16.msra.mxu1 %v3236_v19  ;;  %v3224_v34 = vld [vmem:[%s3571_s17 + $0x40] sm:$0xff]   ;;  %v3225_v35 = vld [vmem:[%s3571_s17 + $0x48] sm:$0xff]   ;;  %v3226_v36 = vld [vmem:[%s3571_s17 + $0x50] sm:$0xff]  }
  0x2c   : > { %2955 = vmatprep.subr.bf16.mxu1 %v3237_v20  ;;  %v3227_v37 = vld [vmem:[%s3571_s17 + $0x58] sm:$0xff]   ;;  %v3228_v38 = vld [vmem:[%s3571_s17 + $0x60] sm:$0xff]   ;;  %v3229_v39 = vld [vmem:[%s3571_s17 + $0x68] sm:$0xff]  }
  0x2d   : > { %2882 = vmatmul.mubr.msk.bf16.gmra.mrb[4].mxu0 %vm751_vm1, %v3202_v10  ;;  %v3230_v40 = vld [vmem:[%s3571_s17 + $0x70] sm:$0xff]   ;;  %v3231_v41 = vld [vmem:[%s3571_s17 + $0x78] sm:$0xff]   ;;  %s3935_s17 = scalar_lea.hbm %s4042_s15, %s4049_s29 }
  0x2e   : > { %2885 = vmatprep.mubr.msk.bf16.mxu0 %vm751_vm1, %v3203_v11 }
  0x2f   : > { %2956 = vmatpush3.bf16.msra.mxu1 %v3237_v20 }
  0x30   : > { %2957 = vmatprep.subr.bf16.mxu1 %v3238_v42 }
  0x33   : > { %2958 = vmatpush3.bf16.msra.mxu1 %v3238_v42 }
  0x34   : > { %2959 = vmatprep.subr.bf16.mxu1 %v3239_v43 }
  0x35   : > { %2886 = vmatmul.mubr.msk.bf16.gmra.mrb[8].mxu0 %vm751_vm1, %v3204_v12 }
  0x36   : > { %2889 = vmatprep.mubr.msk.bf16.mxu0 %vm751_vm1, %v3205_v13 }
  0x37   : > { %2960 = vmatpush3.bf16.msra.mxu1 %v3239_v43 }
  0x38   : > { %2993 = vmatprep.subr.bf16.mxu1 %v3240_v44 }
  0x3d   : > { %2890 = vmatmul.mubr.msk.bf16.gmra.mrb[12].mxu0 %vm751_vm1, %v3206_v14 }
  0x3e   : > { %2893 = vmatprep.mubr.msk.bf16.mxu0 %vm751_vm1, %v3207_v15  ;;  %v3243_v15 = vld [vmem:[%s4034_s7 + $0x18] sm:$0xff]  }
  0x45   : > { %2894 = vmatmul.mubr.msk.bf16.gmra.mrb[16].mxu0 %vm751_vm1, %v3209_v16 }
  0x46   : > { %2897 = vmatprep.mubr.msk.bf16.mxu0 %vm751_vm1, %v3210_v17 }
  0x4d   : > { %2898 = vmatmul.mubr.msk.bf16.gmra.mrb[20].mxu0 %vm751_vm1, %v3211_v21 }
  0x4e   : > { %2901 = vmatprep.mubr.msk.bf16.mxu0 %vm751_vm1, %v3212_v22 }
  0x55   : > { %2902 = vmatmul.mubr.msk.bf16.gmra.mrb[24].mxu0 %vm751_vm1, %v3213_v23  ;;  %v3244_v23 = vld [vmem:[%s4034_s7 + $0x20] sm:$0xff]  }
  0x56   : > { %2905 = vmatprep.mubr.msk.bf16.mxu0 %vm751_vm1, %v3214_v24 }
  0x5d   : > { %2906 = vmatmul.mubr.msk.bf16.gmra.mrb[28].mxu0 %vm751_vm1, %v3215_v25 }
  0x5e   : > { %2913 = vmatprep.mubr.msk.bf16.mxu0 %vm1057_vm2, %v3216_v26 }
  0x65   : > { %2914 = vmatmul.mubr.msk.bf16.vlgmr.msra.gmra.mrb[0].mxu0 %vm1057_vm2, %v3217_v27 }
  0x66   : > { %2917 = vmatprep.mubr.msk.bf16.mxu0 %vm1057_vm2, %v3218_v28 }
  0x6d   : > { %2918 = vmatmul.mubr.msk.bf16.gmra.mrb[4].mxu0 %vm1057_vm2, %v3219_v29 }
  0x6e   : > { %2921 = vmatprep.mubr.msk.bf16.mxu0 %vm1057_vm2, %v3220_v30 }
  0x75   : > { %2922 = vmatmul.mubr.msk.bf16.gmra.mrb[8].mxu0 %vm1057_vm2, %v3221_v31  ;;  %v3245_v31 = vld [vmem:[%s4034_s7 + $0x28] sm:$0xff]  }
  0x76   : > { %2925 = vmatprep.mubr.msk.bf16.mxu0 %vm1057_vm2, %v3222_v32 }
  0x7d   : > { %2926 = vmatmul.mubr.msk.bf16.gmra.mrb[12].mxu0 %vm1057_vm2, %v3223_v33 }
  0x7e   : > { %2929 = vmatprep.mubr.msk.bf16.mxu0 %vm1057_vm2, %v3224_v34 }
  0x85   : > { %2930 = vmatmul.mubr.msk.bf16.gmra.mrb[16].mxu0 %vm1057_vm2, %v3225_v35 }
  0x86   : > { %2933 = vmatprep.mubr.msk.bf16.mxu0 %vm1057_vm2, %v3226_v36 }
  0x8d   : > { %2934 = vmatmul.mubr.msk.bf16.gmra.mrb[20].mxu0 %vm1057_vm2, %v3227_v37 }
  0x8e   : > { %2937 = vmatprep.mubr.msk.bf16.mxu0 %vm1057_vm2, %v3228_v38 }
  0x95   : > { %2938 = vmatmul.mubr.msk.bf16.gmra.mrb[24].mxu0 %vm1057_vm2, %v3229_v39  ;;  %v3246_v39 = vld [vmem:[%s4034_s7 + $0x30] sm:$0xff]  }
  0x96   : > { %2941 = vmatprep.mubr.msk.bf16.mxu0 %vm1057_vm2, %v3230_v40 }
  0x9d   : > { %2942 = vmatmul.mubr.msk.bf16.gmra.mrb[28].mxu0 %vm1057_vm2, %v3231_v41 }
 0x138   : > { %v2915_v46 = vpop.f32.mrb[0].mxu0 }
 0x139   : > { %v1276_v47 = vadd.f32 %v2915_v46, %v3648_v45  ;;  %v1140_v48 = vpop.f32.mrb[1].mxu0 }
 0x13a   : > { %v1274_v49 = vadd.f32 %v3648_v45, %v1140_v48  ;;  %v2916_v50 = vpop.f32.mrb[2].mxu0 }
 0x13b   : > { %v1277_v51 = vadd.f32 %v2916_v50, %v3648_v45  ;;  %v1143_v52 = vpop.f32.mrb[3].mxu0  ;;  %v1308_v54 = vmax.f32 %v1276_v47, 0.0 }
 0x13c   : > { %v1275_v53 = vadd.f32 %v3648_v45, %v1143_v52  ;;  %v1306_v56 = vmax.f32 %v1274_v49, 0.0 }
 0x13d   : > { %v1309_v55 = vmax.f32 %v1277_v51, 0.0 }
 0x13e   : > { %v1307_v57 = vmax.f32 %v1275_v53, 0.0 }
 0x13f   : > { %v1339_v58 = vpack.c.bf16 %v1309_v55, %v1308_v54 }
 0x140   : > { %v2919_v59 = vpop.f32.mrb[4].mxu0  ;;  %v1338_v60 = vpack.c.bf16 %v1307_v57, %v1306_v56 }
 0x141   : > { %v1280_v61 = vadd.f32 %v2919_v59, %v3648_v45  ;;  %v1156_v62 = vpop.f32.mrb[5].mxu0 }
 0x142   : > { %v1278_v0 = vadd.f32 %v3648_v45, %v1156_v62  ;;  %v2920_v1 = vpop.f32.mrb[6].mxu0  ;;  %2961 = vmatprep.mubr.bf16.mxu1 %v1338_v60 }
 0x143   : > { %v1281_v2 = vadd.f32 %v2920_v1, %v3648_v45  ;;  %v1159_v3 = vpop.f32.mrb[7].mxu0  ;;  %2962 = vmatmul.mubr.bf16.vlgmr.msra.gmra.mrb[0].mxu1 %v1339_v58  ;;  %v1312_v5 = vmax.f32 %v1280_v61, 0.0 }
 0x144   : > { %v1279_v4 = vadd.f32 %v3648_v45, %v1159_v3  ;;  %2994 = vmatpush3.bf16.msra.mxu1 %v3240_v44  ;;  %v1310_v8 = vmax.f32 %v1278_v0, 0.0 }
 0x145   : > { %v1313_v6 = vmax.f32 %v1281_v2, 0.0  ;;  %2995 = vmatprep.subr.bf16.mxu1 %v3241_v63 }
 0x146   : > { %v1311_v9 = vmax.f32 %v1279_v4, 0.0 }
 0x147   : > { %v1341_v10 = vpack.c.bf16 %v1313_v6, %v1312_v5 }
 0x148   : > { %v1340_v11 = vpack.c.bf16 %v1311_v9, %v1310_v8  ;;  %v2923_v12 = vpop.f32.mrb[8].mxu0  ;;  %2996 = vmatpush3.bf16.msra.mxu1 %v3241_v63 }
 0x149   : > { %v1284_v13 = vadd.f32 %v2923_v12, %v3648_v45  ;;  %v1172_v14 = vpop.f32.mrb[9].mxu0  ;;  %2997 = vmatprep.subr.bf16.mxu1 %v3242_v7 }
 0x14a   : > { %v1282_v16 = vadd.f32 %v3648_v45, %v1172_v14  ;;  %v2924_v17 = vpop.f32.mrb[10].mxu0  ;;  %2965 = vmatprep.mubr.bf16.mxu1 %v1340_v11 }
 0x14b   : > { %v1285_v18 = vadd.f32 %v2924_v17, %v3648_v45  ;;  %v1175_v19 = vpop.f32.mrb[11].mxu0  ;;  %2966 = vmatmul.mubr.bf16.gmra.mrb[4].mxu1 %v1341_v10  ;;  %v1316_v21 = vmax.f32 %v1284_v13, 0.0 }
 0x14c   : > { %v1283_v20 = vadd.f32 %v3648_v45, %v1175_v19  ;;  %2998 = vmatpush3.bf16.msra.mxu1 %v3242_v7  ;;  %v1314_v24 = vmax.f32 %v1282_v16, 0.0 }
 0x14d   : > { %v1317_v22 = vmax.f32 %v1285_v18, 0.0  ;;  %2999 = vmatprep.subr.bf16.mxu1 %v3243_v15 }
 0x14e   : > { %v1315_v25 = vmax.f32 %v1283_v20, 0.0 }
 0x14f   : > { %v1343_v26 = vpack.c.bf16 %v1317_v22, %v1316_v21 }
 0x150   : > { %v1342_v27 = vpack.c.bf16 %v1315_v25, %v1314_v24  ;;  %v2927_v28 = vpop.f32.mrb[12].mxu0  ;;  %3000 = vmatpush3.bf16.msra.mxu1 %v3243_v15 }
 0x151   : > { %v1288_v29 = vadd.f32 %v2927_v28, %v3648_v45  ;;  %v1188_v30 = vpop.f32.mrb[13].mxu0  ;;  %3001 = vmatprep.subr.bf16.mxu1 %v3244_v23 }
 0x152   : > { %v1286_v32 = vadd.f32 %v3648_v45, %v1188_v30  ;;  %v2928_v33 = vpop.f32.mrb[14].mxu0  ;;  %2969 = vmatprep.mubr.bf16.mxu1 %v1342_v27 }
 0x153   : > { %v1289_v34 = vadd.f32 %v2928_v33, %v3648_v45  ;;  %v1191_v35 = vpop.f32.mrb[15].mxu0  ;;  %2970 = vmatmul.mubr.bf16.gmra.mrb[8].mxu1 %v1343_v26  ;;  %v1320_v37 = vmax.f32 %v1288_v29, 0.0 }
 0x154   : > { %v1287_v36 = vadd.f32 %v3648_v45, %v1191_v35  ;;  %3002 = vmatpush3.bf16.msra.mxu1 %v3244_v23  ;;  %v1318_v40 = vmax.f32 %v1286_v32, 0.0 }
 0x155   : > { %v1321_v38 = vmax.f32 %v1289_v34, 0.0  ;;  %3003 = vmatprep.subr.bf16.mxu1 %v3245_v31 }
 0x156   : > { %v1319_v41 = vmax.f32 %v1287_v36, 0.0 }
 0x157   : > { %v1345_v42 = vpack.c.bf16 %v1321_v38, %v1320_v37  ;;  %v3247_v37 = vld [vmem:[%s4034_s7 + $0x38] sm:$0xff]   ;;  %v3706_v38 = vld [vmem:[%s4033_s6] ss:$0 sm:$0xff] }
 0x158   : > { %v1344_v43 = vpack.c.bf16 %v1319_v41, %v1318_v40  ;;  %v2931_v44 = vpop.f32.mrb[16].mxu0  ;;  %3004 = vmatpush3.bf16.msra.mxu1 %v3245_v31 }
 0x159   : > { %v1292_v46 = vadd.f32 %v2931_v44, %v3648_v45  ;;  %v1204_v47 = vpop.f32.mrb[17].mxu0  ;;  %3005 = vmatprep.subr.bf16.mxu1 %v3246_v39 }
 0x15a   : > { %v1290_v48 = vadd.f32 %v3648_v45, %v1204_v47  ;;  %v2932_v49 = vpop.f32.mrb[18].mxu0  ;;  %2973 = vmatprep.mubr.bf16.mxu1 %v1344_v43 }
 0x15b   : > { %v1293_v50 = vadd.f32 %v2932_v49, %v3648_v45  ;;  %v1207_v51 = vpop.f32.mrb[19].mxu0  ;;  %2974 = vmatmul.mubr.bf16.gmra.mrb[12].mxu1 %v1345_v42  ;;  %v1324_v53 = vmax.f32 %v1292_v46, 0.0 }
 0x15c   : > { %v1291_v52 = vadd.f32 %v3648_v45, %v1207_v51  ;;  %3006 = vmatpush3.bf16.msra.mxu1 %v3246_v39  ;;  %v1322_v55 = vmax.f32 %v1290_v48, 0.0 }
 0x15d   : > { %v1325_v54 = vmax.f32 %v1293_v50, 0.0  ;;  %3007 = vmatprep.subr.bf16.mxu1 %v3247_v37 }
 0x15e   : > { %v1323_v56 = vmax.f32 %v1291_v52, 0.0 }
 0x15f   : > { %v1347_v57 = vpack.c.bf16 %v1325_v54, %v1324_v53 }
 0x160   : > { %v1346_v58 = vpack.c.bf16 %v1323_v56, %v1322_v55  ;;  %v2935_v59 = vpop.f32.mrb[20].mxu0  ;;  %3008 = vmatpush3.bf16.msra.mxu1 %v3247_v37 }
 0x161   : > { %v1296_v60 = vadd.f32 %v2935_v59, %v3648_v45  ;;  %v1220_v61 = vpop.f32.mrb[21].mxu0 }
 0x162   : > { %v1294_v62 = vadd.f32 %v3648_v45, %v1220_v61  ;;  %v2936_v63 = vpop.f32.mrb[22].mxu0  ;;  %2977 = vmatprep.mubr.bf16.mxu1 %v1346_v58 }
 0x163   : > { %v1297_v0 = vadd.f32 %v2936_v63, %v3648_v45  ;;  %v1223_v1 = vpop.f32.mrb[23].mxu0  ;;  %2978 = vmatmul.mubr.bf16.gmra.mrb[16].mxu1 %v1347_v57  ;;  %v1328_v3 = vmax.f32 %v1296_v60, 0.0 }
 0x164   : > { %v1295_v2 = vadd.f32 %v3648_v45, %v1223_v1  ;;  %v1326_v5 = vmax.f32 %v1294_v62, 0.0 }
 0x165   : > { %v1329_v4 = vmax.f32 %v1297_v0, 0.0 }
 0x166   : > { %v1327_v6 = vmax.f32 %v1295_v2, 0.0 }
 0x167   : > { %v1349_v7 = vpack.c.bf16 %v1329_v4, %v1328_v3 }
 0x168   : > { %v1348_v8 = vpack.c.bf16 %v1327_v6, %v1326_v5  ;;  %v2939_v9 = vpop.f32.mrb[24].mxu0 }
 0x169   : > { %v1300_v10 = vadd.f32 %v2939_v9, %v3648_v45  ;;  %v1236_v11 = vpop.f32.mrb[25].mxu0 }
 0x16a   : > { %v1298_v12 = vadd.f32 %v3648_v45, %v1236_v11  ;;  %v2940_v13 = vpop.f32.mrb[26].mxu0  ;;  %2981 = vmatprep.mubr.bf16.mxu1 %v1348_v8 }
 0x16b   : > { %v1301_v14 = vadd.f32 %v2940_v13, %v3648_v45  ;;  %v1239_v15 = vpop.f32.mrb[27].mxu0  ;;  %2982 = vmatmul.mubr.bf16.gmra.mrb[20].mxu1 %v1349_v7  ;;  %v1332_v17 = vmax.f32 %v1300_v10, 0.0 }
 0x16c   : > { %v1299_v16 = vadd.f32 %v3648_v45, %v1239_v15  ;;  %v1330_v19 = vmax.f32 %v1298_v12, 0.0 }
 0x16d   : > { %v1333_v18 = vmax.f32 %v1301_v14, 0.0 }
 0x16e   : > { %v1331_v20 = vmax.f32 %v1299_v16, 0.0 }
 0x16f   : > { %v1351_v21 = vpack.c.bf16 %v1333_v18, %v1332_v17 }
 0x170   : > { %v1350_v22 = vpack.c.bf16 %v1331_v20, %v1330_v19  ;;  %v2943_v23 = vpop.f32.mrb[28].mxu0 }
 0x171   : > { %v1304_v24 = vadd.f32 %v2943_v23, %v3648_v45  ;;  %v1252_v25 = vpop.f32.mrb[29].mxu0 }
 0x172   : > { %v1302_v26 = vadd.f32 %v3648_v45, %v1252_v25  ;;  %v2944_v27 = vpop.f32.mrb[30].mxu0  ;;  %2985 = vmatprep.mubr.bf16.mxu1 %v1350_v22 }
 0x173   : > { %v1305_v28 = vadd.f32 %v2944_v27, %v3648_v45  ;;  %v1255_v29 = vpop.f32.mrb[31].mxu0  ;;  %2986 = vmatmul.mubr.bf16.gmra.mrb[24].mxu1 %v1351_v21  ;;  %v1336_v31 = vmax.f32 %v1304_v24, 0.0 }
 0x174   : > { %v1303_v30 = vadd.f32 %v3648_v45, %v1255_v29  ;;  %v1334_v33 = vmax.f32 %v1302_v26, 0.0 }
 0x175   : > { %v1337_v32 = vmax.f32 %v1305_v28, 0.0 }
 0x176   : > { %v1335_v34 = vmax.f32 %v1303_v30, 0.0 }
 0x177   : > { %v1353_v35 = vpack.c.bf16 %v1337_v32, %v1336_v31 }
 0x178   : > { %v1352_v36 = vpack.c.bf16 %v1335_v34, %v1334_v33 }
 0x17a   : > { %2989 = vmatprep.mubr.bf16.mxu1 %v1352_v36 }
 0x17b   : > { %2990 = vmatmul.mubr.bf16.gmra.mrb[28].mxu1 %v1353_v35 }
 0x216   : > { %v2963_v45 = vpop.f32.mrb[0].mxu1 }
 0x217   : > { %v1468_v39 = vadd.f32 %v2963_v45, %v3706_v38  ;;  %v1459_v40 = vpop.f32.mrb[1].mxu1 }
 0x218   : > { %v1460_v41 = vadd.f32 %v3706_v38, %v1459_v40  ;;  %v2964_v42 = vpop.f32.mrb[2].mxu1 }
 0x219   : > { %v1471_v43 = vadd.f32 %v2964_v42, %v3706_v38  ;;  %v1462_v44 = vpop.f32.mrb[3].mxu1  ;;  %v1588_v47 = vmax.f32 %v1468_v39, 0.0 }
 0x21a   : > { %v1463_v46 = vadd.f32 %v3706_v38, %v1462_v44  ;;  %v1586_v49 = vmax.f32 %v1460_v41, 0.0 }
 0x21b   : > { %v1589_v48 = vmax.f32 %v1471_v43, 0.0 }
 0x21c   : > { %v1587_v50 = vmax.f32 %v1463_v46, 0.0 }
 0x21d   : > { %v1619_v51 = vpack.c.bf16 %v1589_v48, %v1588_v47 }
 0x21e   : > { %v1618_v52 = vpack.c.bf16 %v1587_v50, %v1586_v49  ;;  %v2967_v53 = vpop.f32.mrb[4].mxu1 }
 0x21f   : > { %v1484_v54 = vadd.f32 %v2967_v53, %v3706_v38  ;;  %v1475_v55 = vpop.f32.mrb[5].mxu1 }
 0x220   : > { %v1476_v56 = vadd.f32 %v3706_v38, %v1475_v55  ;;  %v2968_v57 = vpop.f32.mrb[6].mxu1  ;;  %3009 = vmatprep.mubr.bf16.mxu1 %v1618_v52 }
 0x221   : > { %v1487_v58 = vadd.f32 %v2968_v57, %v3706_v38  ;;  %v1478_v59 = vpop.f32.mrb[7].mxu1  ;;  %3010 = vmatmul.mubr.bf16.vlgmr.msra.gmra.mrb[32].mxu1 %v1619_v51  ;;  %v1592_v61 = vmax.f32 %v1484_v54, 0.0 }
 0x222   : > { %v1479_v60 = vadd.f32 %v3706_v38, %v1478_v59  ;;  %v1590_v63 = vmax.f32 %v1476_v56, 0.0 }
 0x223   : > { %v1593_v62 = vmax.f32 %v1487_v58, 0.0 }
 0x224   : > { %v1591_v0 = vmax.f32 %v1479_v60, 0.0 }
 0x225   : > { %v1621_v1 = vpack.c.bf16 %v1593_v62, %v1592_v61 }
 0x226   : > { %v1620_v2 = vpack.c.bf16 %v1591_v0, %v1590_v63  ;;  %v2971_v3 = vpop.f32.mrb[8].mxu1 }
 0x227   : > { %v1500_v4 = vadd.f32 %v2971_v3, %v3706_v38  ;;  %v1491_v5 = vpop.f32.mrb[9].mxu1 }
 0x228   : > { %v1492_v6 = vadd.f32 %v3706_v38, %v1491_v5  ;;  %v2972_v7 = vpop.f32.mrb[10].mxu1  ;;  %3013 = vmatprep.mubr.bf16.mxu1 %v1620_v2 }
 0x229   : > { %v1503_v8 = vadd.f32 %v2972_v7, %v3706_v38  ;;  %v1494_v9 = vpop.f32.mrb[11].mxu1  ;;  %3014 = vmatmul.mubr.bf16.gmra.mrb[36].mxu1 %v1621_v1  ;;  %v1596_v11 = vmax.f32 %v1500_v4, 0.0 }
 0x22a   : > { %v1495_v10 = vadd.f32 %v3706_v38, %v1494_v9  ;;  %v1594_v13 = vmax.f32 %v1492_v6, 0.0 }
 0x22b   : > { %v1597_v12 = vmax.f32 %v1503_v8, 0.0 }
 0x22c   : > { %v1595_v14 = vmax.f32 %v1495_v10, 0.0 }
 0x22d   : > { %v1623_v15 = vpack.c.bf16 %v1597_v12, %v1596_v11 }
 0x22e   : > { %v1622_v16 = vpack.c.bf16 %v1595_v14, %v1594_v13  ;;  %v2975_v17 = vpop.f32.mrb[12].mxu1 }
 0x22f   : > { %v1516_v18 = vadd.f32 %v2975_v17, %v3706_v38  ;;  %v1507_v19 = vpop.f32.mrb[13].mxu1 }
 0x230   : > { %v1508_v20 = vadd.f32 %v3706_v38, %v1507_v19  ;;  %v2976_v21 = vpop.f32.mrb[14].mxu1  ;;  %3017 = vmatprep.mubr.bf16.mxu1 %v1622_v16 }
 0x231   : > { %v1519_v22 = vadd.f32 %v2976_v21, %v3706_v38  ;;  %v1510_v23 = vpop.f32.mrb[15].mxu1  ;;  %3018 = vmatmul.mubr.bf16.gmra.mrb[40].mxu1 %v1623_v15  ;;  %v1600_v25 = vmax.f32 %v1516_v18, 0.0 }
 0x232   : > { %v1511_v24 = vadd.f32 %v3706_v38, %v1510_v23  ;;  %v1598_v27 = vmax.f32 %v1508_v20, 0.0 }
 0x233   : > { %v1601_v26 = vmax.f32 %v1519_v22, 0.0 }
 0x234   : > { %v1599_v28 = vmax.f32 %v1511_v24, 0.0  ;;  %v3248_v24 = vld [vmem:[%s4036_s9] sm:$0xff]  }
 0x235   : > { %v1625_v29 = vpack.c.bf16 %v1601_v26, %v1600_v25  ;;  %v3384_v25 = vmov 0.0   ;;  %v3250_v26 = vld [vmem:[%s4036_s9 + $0x10] sm:$0xff]  }
 0x236   : > { %v1624_v30 = vpack.c.bf16 %v1599_v28, %v1598_v27  ;;  %v2979_v31 = vpop.f32.mrb[16].mxu1  ;;  %3041 = vmatprep.subr.bf16.mxu0 %v3384_v25  ;;  %3061 = vmatprep.subr.bf16.mxu1 %v3384_v25  ;;  %v3251_v27 = vld [vmem:[%s4036_s9 + $0x18] sm:$0xff]   ;;  %v3252_v28 = vld [vmem:[%s4036_s9 + $0x20] sm:$0xff]  }
 0x237   : > { %v1532_v32 = vadd.f32 %v2979_v31, %v3706_v38  ;;  %v1523_v33 = vpop.f32.mrb[17].mxu1  ;;  %3042 = vmatpush3.bf16.msra.mxu0 %v3248_v24  ;;  %v3255_v31 = vld [vmem:[%s4036_s9 + $0x38] sm:$0xff]   ;;  %3057 = vmatprep.mubr.msk.bf16.mxu0 %vm3385_vm3, %v3384_v25 }
 0x238   : > { %v1524_v34 = vadd.f32 %v3706_v38, %v1523_v33  ;;  %v2980_v35 = vpop.f32.mrb[18].mxu1  ;;  %3021 = vmatprep.mubr.bf16.mxu1 %v1624_v30  ;;  %3043 = vmatprep.subr.bf16.mxu0 %v3384_v25  ;;  %v3254_v30 = vld [vmem:[%s4036_s9 + $0x30] sm:$0xff]   ;;  %v3257_v33 = vld [vmem:[%s4038_s11 + $0x8] sm:$0xff]  }
 0x239   : > { %v1535_v36 = vadd.f32 %v2980_v35, %v3706_v38  ;;  %v1526_v37 = vpop.f32.mrb[19].mxu1  ;;  %3022 = vmatmul.mubr.bf16.gmra.mrb[44].mxu1 %v1625_v29  ;;  %v1604_v39 = vmax.f32 %v1532_v32, 0.0  ;;  %v3253_v29 = vld [vmem:[%s4036_s9 + $0x28] sm:$0xff]   ;;  %v3256_v32 = vld [vmem:[%s4038_s11] sm:$0xff]   ;;  %v3259_v35 = vld [vmem:[%s4038_s11 + $0x18] sm:$0xff]  }
 0x23a   : > { %v1527_v45 = vadd.f32 %v3706_v38, %v1526_v37  ;;  %v1602_v41 = vmax.f32 %v1524_v34, 0.0  ;;  %3062 = vmatpush3.bf16.msra.mxu1 %v3256_v32  ;;  %v3258_v34 = vld [vmem:[%s4038_s11 + $0x10] sm:$0xff]   ;;  %v3261_v37 = vld [vmem:[%s4038_s11 + $0x28] sm:$0xff]  }
 0x23b   : > { %v1605_v40 = vmax.f32 %v1535_v36, 0.0  ;;  %3063 = vmatprep.subr.bf16.mxu1 %v3384_v25  ;;  %v3260_v36 = vld [vmem:[%s4038_s11 + $0x20] sm:$0xff]  }
 0x23c   : > { %v1603_v42 = vmax.f32 %v1527_v45, 0.0  ;;  %v3262_v45 = vld [vmem:[%s4038_s11 + $0x30] sm:$0xff]  }
 0x23d   : > { %v1627_v43 = vpack.c.bf16 %v1605_v40, %v1604_v39  ;;  %v3809_v39 = vld [vmem:[%s4035_s8] ss:$0 sm:$0xff] }
 0x23e   : > { %v1626_v44 = vpack.c.bf16 %v1603_v42, %v1602_v41  ;;  %v2983_v46 = vpop.f32.mrb[20].mxu1  ;;  %3064 = vmatpush3.bf16.msra.mxu1 %v3257_v33 }
 0x23f   : > { %v1548_v47 = vadd.f32 %v2983_v46, %v3706_v38  ;;  %v1539_v48 = vpop.f32.mrb[21].mxu1  ;;  %3065 = vmatprep.subr.bf16.mxu1 %v3384_v25 }
 0x240   : > { %v1540_v49 = vadd.f32 %v3706_v38, %v1539_v48  ;;  %v2984_v50 = vpop.f32.mrb[22].mxu1  ;;  %3025 = vmatprep.mubr.bf16.mxu1 %v1626_v44 }
 0x241   : > { %v1551_v51 = vadd.f32 %v2984_v50, %v3706_v38  ;;  %v1542_v52 = vpop.f32.mrb[23].mxu1  ;;  %3026 = vmatmul.mubr.bf16.gmra.mrb[48].mxu1 %v1627_v43  ;;  %v1608_v54 = vmax.f32 %v1548_v47, 0.0 }
 0x242   : > { %v1543_v53 = vadd.f32 %v3706_v38, %v1542_v52  ;;  %v1606_v56 = vmax.f32 %v1540_v49, 0.0  ;;  %3066 = vmatpush3.bf16.msra.mxu1 %v3258_v34 }
 0x243   : > { %v1609_v55 = vmax.f32 %v1551_v51, 0.0  ;;  %3067 = vmatprep.subr.bf16.mxu1 %v3384_v25 }
 0x244   : > { %v1607_v57 = vmax.f32 %v1543_v53, 0.0 }
 0x245   : > { %v1629_v58 = vpack.c.bf16 %v1609_v55, %v1608_v54 }
 0x246   : > { %v1628_v59 = vpack.c.bf16 %v1607_v57, %v1606_v56  ;;  %v2987_v60 = vpop.f32.mrb[24].mxu1  ;;  %3068 = vmatpush3.bf16.msra.mxu1 %v3259_v35 }
 0x247   : > { %v1564_v61 = vadd.f32 %v2987_v60, %v3706_v38  ;;  %v1555_v62 = vpop.f32.mrb[25].mxu1  ;;  %3069 = vmatprep.subr.bf16.mxu1 %v3384_v25 }
 0x248   : > { %v1556_v63 = vadd.f32 %v3706_v38, %v1555_v62  ;;  %v2988_v0 = vpop.f32.mrb[26].mxu1  ;;  %3029 = vmatprep.mubr.bf16.mxu1 %v1628_v59 }
 0x249   : > { %v1567_v1 = vadd.f32 %v2988_v0, %v3706_v38  ;;  %v1558_v2 = vpop.f32.mrb[27].mxu1  ;;  %3030 = vmatmul.mubr.bf16.gmra.mrb[52].mxu1 %v1629_v58  ;;  %v1612_v4 = vmax.f32 %v1564_v61, 0.0 }
 0x24a   : > { %v1559_v3 = vadd.f32 %v3706_v38, %v1558_v2  ;;  %v1610_v6 = vmax.f32 %v1556_v63, 0.0  ;;  %3070 = vmatpush3.bf16.msra.mxu1 %v3260_v36 }
 0x24b   : > { %v1613_v5 = vmax.f32 %v1567_v1, 0.0  ;;  %3071 = vmatprep.subr.bf16.mxu1 %v3384_v25 }
 0x24c   : > { %v1611_v7 = vmax.f32 %v1559_v3, 0.0 }
 0x24d   : > { %v1631_v8 = vpack.c.bf16 %v1613_v5, %v1612_v4 }
 0x24e   : > { %v1630_v9 = vpack.c.bf16 %v1611_v7, %v1610_v6  ;;  %v2991_v10 = vpop.f32.mrb[28].mxu1  ;;  %3072 = vmatpush3.bf16.msra.mxu1 %v3261_v37 }
 0x24f   : > { %v1580_v11 = vadd.f32 %v2991_v10, %v3706_v38  ;;  %v1571_v12 = vpop.f32.mrb[29].mxu1  ;;  %3073 = vmatprep.subr.bf16.mxu1 %v3384_v25 }
 0x250   : > { %v1572_v13 = vadd.f32 %v3706_v38, %v1571_v12  ;;  %v2992_v14 = vpop.f32.mrb[30].mxu1  ;;  %3033 = vmatprep.mubr.bf16.mxu1 %v1630_v9 }
 0x251   : > { %v1583_v15 = vadd.f32 %v2992_v14, %v3706_v38  ;;  %v1574_v16 = vpop.f32.mrb[31].mxu1  ;;  %3034 = vmatmul.mubr.bf16.gmra.mrb[56].mxu1 %v1631_v8  ;;  %v1616_v18 = vmax.f32 %v1580_v11, 0.0 }
 0x252   : > { %v1575_v17 = vadd.f32 %v3706_v38, %v1574_v16  ;;  %v1614_v20 = vmax.f32 %v1572_v13, 0.0  ;;  %v3249_v38 = vld [vmem:[%s4036_s9 + $0x8] sm:$0xff]   ;;  %3074 = vmatpush3.bf16.msra.mxu1 %v3262_v45 }
 0x253   : > { %v1617_v19 = vmax.f32 %v1583_v15, 0.0  ;;  %3044 = vmatpush3.bf16.msra.mxu0 %v3249_v38  ;;  %3075 = vmatprep.subr.bf16.mxu1 %v3384_v25 }
 0x254   : > { %v1615_v21 = vmax.f32 %v1575_v17, 0.0  ;;  %3045 = vmatprep.subr.bf16.mxu0 %v3384_v25 }
 0x255   : > { %v1633_v22 = vpack.c.bf16 %v1617_v19, %v1616_v18 }
 0x256   : > { %v1632_v23 = vpack.c.bf16 %v1615_v21, %v1614_v20 }
 0x257   : > { %3046 = vmatpush3.bf16.msra.mxu0 %v3250_v26 }
 0x258   : > { %3037 = vmatprep.mubr.bf16.mxu1 %v1632_v23  ;;  %3047 = vmatprep.subr.bf16.mxu0 %v3384_v25 }
 0x259   : > { %3038 = vmatmul.mubr.bf16.gmra.mrb[60].mxu1 %v1633_v22 }
 0x25a   : > { %3077 = vmatprep.mubr.msk.bf16.mxu1 %vm3385_vm3, %v3384_v25 }
 0x25b   : > { %3048 = vmatpush3.bf16.msra.mxu0 %v3251_v27 }
 0x25c   : > { %3049 = vmatprep.subr.bf16.mxu0 %v3384_v25 }
 0x25f   : > { %3050 = vmatpush3.bf16.msra.mxu0 %v3252_v28 }
 0x260   : > { %3051 = vmatprep.subr.bf16.mxu0 %v3384_v25 }
 0x263   : > { %3052 = vmatpush3.bf16.msra.mxu0 %v3253_v29 }
 0x264   : > { %3053 = vmatprep.subr.bf16.mxu0 %v3384_v25 }
 0x267   : > { %3054 = vmatpush3.bf16.msra.mxu0 %v3254_v30 }
 0x268   : > { %3055 = vmatprep.subr.bf16.mxu0 %v3384_v25 }
 0x26b   : > { %3056 = vmatpush3.bf16.msra.mxu0 %v3255_v31 }
 0x26c   : > { %3081 = vmatprep.subr.bf16.mxu0 %v3384_v25 }
 0x2f4   : > { %v3011_v40 = vpop.f32.mrb[32].mxu1 }
 0x2f5   : > { %v1748_v41 = vadd.f32 %v3011_v40, %v3809_v39  ;;  %v1739_v42 = vpop.f32.mrb[33].mxu1 }
 0x2f6   : > { %v1740_v43 = vadd.f32 %v3809_v39, %v1739_v42  ;;  %v3012_v44 = vpop.f32.mrb[34].mxu1 }
 0x2f7   : > { %v1751_v46 = vadd.f32 %v3012_v44, %v3809_v39  ;;  %v1742_v47 = vpop.f32.mrb[35].mxu1  ;;  %v1868_v49 = vmax.f32 %v1748_v41, 0.0 }
 0x2f8   : > { %v1743_v48 = vadd.f32 %v3809_v39, %v1742_v47  ;;  %v1866_v51 = vmax.f32 %v1740_v43, 0.0 }
 0x2f9   : > { %v1869_v50 = vmax.f32 %v1751_v46, 0.0 }
 0x2fa   : > { %v1867_v52 = vmax.f32 %v1743_v48, 0.0 }
 0x2fb   : > { %v1905_v53 = vmax.f32 %v1868_v49, %v1869_v50 }
 0x2fc   : > { %v1898_v54 = vmax.f32 %v1866_v51, %v1867_v52  ;;  %v3015_v55 = vpop.f32.mrb[36].mxu1 }
 0x2fd   : > { %v1906_v56 = vrot.slane %v1905_v53, 4  ;;  %v1764_v57 = vadd.f32 %v3015_v55, %v3809_v39  ;;  %v1755_v58 = vpop.f32.mrb[37].mxu1 }
 0x2fe   : > { %v1899_v59 = vrot.slane %v1898_v54, 4  ;;  %v1756_v60 = vadd.f32 %v3809_v39, %v1755_v58  ;;  %v3016_v61 = vpop.f32.mrb[38].mxu1 }
 0x2ff   : > { %v1907_v62 = vmax.f32 %v1905_v53, %v1906_v56  ;;  %v1767_v63 = vadd.f32 %v3016_v61, %v3809_v39  ;;  %v1758_v0 = vpop.f32.mrb[39].mxu1  ;;  %v1872_v4 = vmax.f32 %v1764_v57, 0.0 }
 0x300   : > { %v1900_v1 = vmax.f32 %v1898_v54, %v1899_v59  ;;  %v1759_v2 = vadd.f32 %v3809_v39, %v1758_v0  ;;  %v1870_v7 = vmax.f32 %v1756_v60, 0.0 }
 0x301   : > { %v1908_v3 = vrot.slane %v1907_v62, 2  ;;  %v1873_v5 = vmax.f32 %v1767_v63, 0.0 }
 0x302   : > { %v1901_v6 = vrot.slane %v1900_v1, 2  ;;  %v1871_v8 = vmax.f32 %v1759_v2, 0.0 }
 0x303   : > { %v1909_v9 = vmax.f32 %v1907_v62, %v1908_v3  ;;  %v1919_v10 = vmax.f32 %v1872_v4, %v1873_v5 }
 0x304   : > { %v1902_v11 = vmax.f32 %v1900_v1, %v1901_v6  ;;  %v1912_v12 = vmax.f32 %v1870_v7, %v1871_v8  ;;  %v3019_v13 = vpop.f32.mrb[40].mxu1 }
 0x305   : > { %v1910_v14 = vrot.slane %v1909_v9, 1  ;;  %v1920_v15 = vrot.slane %v1919_v10, 4  ;;  %v1780_v16 = vadd.f32 %v3019_v13, %v3809_v39  ;;  %v1771_v17 = vpop.f32.mrb[41].mxu1 }
 0x306   : > { %v1903_v18 = vrot.slane %v1902_v11, 1  ;;  %v1913_v19 = vrot.slane %v1912_v12, 4  ;;  %v1772_v20 = vadd.f32 %v3809_v39, %v1771_v17  ;;  %v3020_v21 = vpop.f32.mrb[42].mxu1 }
 0x307   : > { %v1911_v22 = vmax.f32 %v1909_v9, %v1910_v14  ;;  %v1921_v23 = vmax.f32 %v1919_v10, %v1920_v15  ;;  %v1783_v24 = vadd.f32 %v3020_v21, %v3809_v39  ;;  %v1774_v38 = vpop.f32.mrb[43].mxu1  ;;  %v1876_v28 = vmax.f32 %v1780_v16, 0.0 }
 0x308   : > { %v1904_v26 = vmax.f32 %v1902_v11, %v1903_v18  ;;  %v1914_v27 = vmax.f32 %v1912_v12, %v1913_v19  ;;  %v1775_v29 = vadd.f32 %v3809_v39, %v1774_v38  ;;  %v1874_v32 = vmax.f32 %v1772_v20, 0.0 }
 0x309   : > { %v2052_v30 = vpack.c.bf16 %v1911_v22, %v1911_v22  ;;  %v1922_v31 = vrot.slane %v1921_v23, 2  ;;  %v1877_v33 = vmax.f32 %v1783_v24, 0.0 }
 0x30a   : > { %v2027_v34 = vsel %vm2026_vm4, %v1911_v22, %v1904_v26  ;;  %v2051_v35 = vpack.c.bf16 %v1904_v26, %v1904_v26  ;;  %v1915_v36 = vrot.slane %v1914_v27, 2  ;;  %v1875_v37 = vmax.f32 %v1775_v29, 0.0 }
 0x30b   : > { %v2107_v45 = vunpack.c.l.b16 %v2052_v30  ;;  %v1923_v40 = vmax.f32 %v1921_v23, %v1922_v31  ;;  %v1933_v41 = vmax.f32 %v1876_v28, %v1877_v33 }
 0x30c   : > { %v2106_v42 = vunpack.c.l.b16 %v2051_v35  ;;  %v1916_v43 = vmax.f32 %v1914_v27, %v1915_v36  ;;  %v1926_v44 = vmax.f32 %v1874_v32, %v1875_v37  ;;  %v3023_v46 = vpop.f32.mrb[44].mxu1 }
 0x30d   : > { %v1924_v47 = vrot.slane %v1923_v40, 1  ;;  %v1934_v48 = vrot.slane %v1933_v41, 4  ;;  %v1796_v49 = vadd.f32 %v3023_v46, %v3809_v39  ;;  %v1787_v50 = vpop.f32.mrb[45].mxu1 }
 0x30e   : > { %v2122_v51 = vsel %vm2026_vm4, %v2107_v45, %v2106_v42  ;;  %v1917_v52 = vrot.slane %v1916_v43, 1  ;;  %v1927_v53 = vrot.slane %v1926_v44, 4  ;;  %v1788_v54 = vadd.f32 %v3809_v39, %v1787_v50  ;;  %v3024_v55 = vpop.f32.mrb[46].mxu1 }
 0x30f   : > { %v1925_v56 = vmax.f32 %v1923_v40, %v1924_v47  ;;  %v1935_v57 = vmax.f32 %v1933_v41, %v1934_v48  ;;  %v1799_v58 = vadd.f32 %v3024_v55, %v3809_v39  ;;  %v1790_v59 = vpop.f32.mrb[47].mxu1  ;;  %v1880_v62 = vmax.f32 %v1796_v49, 0.0 }
 0x310   : > { %v1918_v60 = vmax.f32 %v1916_v43, %v1917_v52  ;;  %v1928_v61 = vmax.f32 %v1926_v44, %v1927_v53  ;;  %v1791_v63 = vadd.f32 %v3809_v39, %v1790_v59  ;;  %v1878_v2 = vmax.f32 %v1788_v54, 0.0 }
 0x311   : > { %v2054_v0 = vpack.c.bf16 %v1925_v56, %v1925_v56  ;;  %v1936_v1 = vrot.slane %v1935_v57, 2  ;;  %v1881_v3 = vmax.f32 %v1799_v58, 0.0 }
 0x312   : > { %v2029_v4 = vsel %vm2028_vm5, %v1918_v60, %v2027_v34  ;;  %v2053_v5 = vpack.c.bf16 %v1918_v60, %v1918_v60  ;;  %v1929_v6 = vrot.slane %v1928_v61, 2  ;;  %v1879_v7 = vmax.f32 %v1791_v63, 0.0 }
 0x313   : > { %v1937_v8 = vmax.f32 %v1935_v57, %v1936_v1  ;;  %v2031_v9 = vsel %vm2030_vm6, %v1925_v56, %v2029_v4  ;;  %v1947_v10 = vmax.f32 %v1880_v62, %v1881_v3  ;;  %v2109_v15 = vunpack.c.l.b16 %v2054_v0 }
 0x314   : > { %v2108_v11 = vunpack.c.l.b16 %v2053_v5  ;;  %v1930_v12 = vmax.f32 %v1928_v61, %v1929_v6  ;;  %v1940_v13 = vmax.f32 %v1878_v2, %v1879_v7  ;;  %v3027_v14 = vpop.f32.mrb[48].mxu1 }
 0x315   : > { %v1938_v16 = vrot.slane %v1937_v8, 1  ;;  %v1948_v17 = vrot.slane %v1947_v10, 4  ;;  %v1812_v18 = vadd.f32 %v3027_v14, %v3809_v39  ;;  %v1803_v19 = vpop.f32.mrb[49].mxu1 }
 0x316   : > { %v2123_v20 = vsel %vm2028_vm5, %v2108_v11, %v2122_v51  ;;  %v1931_v21 = vrot.slane %v1930_v12, 1  ;;  %v1941_v22 = vrot.slane %v1940_v13, 4  ;;  %v1804_v23 = vadd.f32 %v3809_v39, %v1803_v19  ;;  %v3028_v24 = vpop.f32.mrb[50].mxu1 }
 0x317   : > { %v1939_v38 = vmax.f32 %v1937_v8, %v1938_v16  ;;  %v2124_v26 = vsel %vm2030_vm6, %v2109_v15, %v2123_v20  ;;  %v1949_v27 = vmax.f32 %v1947_v10, %v1948_v17  ;;  %v1806_v28 = vpop.f32.mrb[51].mxu1  ;;  %v1815_v31 = vadd.f32 %v3028_v24, %v3809_v39 }
 0x318   : > { %v1932_v29 = vmax.f32 %v1930_v12, %v1931_v21  ;;  %v1942_v30 = vmax.f32 %v1940_v13, %v1941_v22  ;;  %v1884_v33 = vmax.f32 %v1812_v18, 0.0  ;;  %v1882_v34 = vmax.f32 %v1804_v23, 0.0 }
 0x319   : > { %v1950_v32 = vrot.slane %v1949_v27, 2  ;;  %v1807_v35 = vadd.f32 %v3809_v39, %v1806_v28  ;;  %v1885_v40 = vmax.f32 %v1815_v31, 0.0  ;;  %v2056_v41 = vpack.c.bf16 %v1939_v38, %v1939_v38 }
 0x31a   : > { %v2033_v36 = vsel %vm2032_vm7, %v1932_v29, %v2031_v9  ;;  %v2055_v37 = vpack.c.bf16 %v1932_v29, %v1932_v29  ;;  %v1943_v45 = vrot.slane %v1942_v30, 2 }
 0x31b   : > { %v1951_v42 = vmax.f32 %v1949_v27, %v1950_v32  ;;  %v1883_v43 = vmax.f32 %v1807_v35, 0.0  ;;  %v2035_v44 = vsel %vm2034_vm8, %v1939_v38, %v2033_v36  ;;  %v1961_v48 = vmax.f32 %v1884_v33, %v1885_v40 }
 0x31c   : > { %v2110_v46 = vunpack.c.l.b16 %v2055_v37  ;;  %v1944_v47 = vmax.f32 %v1942_v30, %v1943_v45  ;;  %v3031_v49 = vpop.f32.mrb[52].mxu1  ;;  %v2111_v59 = vunpack.c.l.b16 %v2056_v41 }
 0x31d   : > { %v1952_v50 = vrot.slane %v1951_v42, 1  ;;  %v1954_v51 = vmax.f32 %v1882_v34, %v1883_v43  ;;  %v1828_v52 = vadd.f32 %v3031_v49, %v3809_v39  ;;  %v1819_v53 = vpop.f32.mrb[53].mxu1  ;;  %v1962_v56 = vrot.slane %v1961_v48, 4 }
 0x31e   : > { %v2125_v54 = vsel %vm2032_vm7, %v2110_v46, %v2124_v26  ;;  %v1945_v55 = vrot.slane %v1944_v47, 1  ;;  %v1820_v57 = vadd.f32 %v3809_v39, %v1819_v53  ;;  %v3032_v58 = vpop.f32.mrb[54].mxu1 }
 0x31f   : > { %v1953_v60 = vmax.f32 %v1951_v42, %v1952_v50  ;;  %v1955_v61 = vrot.slane %v1954_v51, 4  ;;  %v1831_v62 = vadd.f32 %v3032_v58, %v3809_v39  ;;  %v1822_v63 = vpop.f32.mrb[55].mxu1  ;;  %v1963_v1 = vmax.f32 %v1961_v48, %v1962_v56 }
 0x320   : > { %v1946_v0 = vmax.f32 %v1944_v47, %v1945_v55  ;;  %v1888_v2 = vmax.f32 %v1828_v52, 0.0  ;;  %v1823_v3 = vadd.f32 %v3809_v39, %v1822_v63  ;;  %v1886_v5 = vmax.f32 %v1820_v57, 0.0 }
 0x321   : > { %v1956_v4 = vmax.f32 %v1954_v51, %v1955_v61  ;;  %v1889_v6 = vmax.f32 %v1831_v62, 0.0  ;;  %v2126_v7 = vsel %vm2034_vm8, %v2111_v59, %v2125_v54  ;;  %v1964_v9 = vrot.slane %v1963_v1, 2 }
 0x322   : > { %v2057_v8 = vpack.c.bf16 %v1946_v0, %v1946_v0  ;;  %v1887_v10 = vmax.f32 %v1823_v3, 0.0  ;;  %v2037_v11 = vsel %vm2036_vm9, %v1946_v0, %v2035_v44  ;;  %v2058_v12 = vpack.c.bf16 %v1953_v60, %v1953_v60 }
 0x323   : > { %v1957_v13 = vrot.slane %v1956_v4, 2  ;;  %v1975_v14 = vmax.f32 %v1888_v2, %v1889_v6  ;;  %v2039_v15 = vsel %vm2038_vm10, %v1953_v60, %v2037_v11  ;;  %v1965_v17 = vmax.f32 %v1963_v1, %v1964_v9 }
 0x324   : > { %v2112_v16 = vunpack.c.l.b16 %v2057_v8  ;;  %v1968_v18 = vmax.f32 %v1886_v5, %v1887_v10  ;;  %v3035_v19 = vpop.f32.mrb[56].mxu1  ;;  %2049 = vst [vmem:[%s3853_s19] sm:$0xff] %v2039_v15  ;;  %v2113_v29 = vunpack.c.l.b16 %v2058_v12 }
 0x325   : > { %v1958_v20 = vmax.f32 %v1956_v4, %v1957_v13  ;;  %v1976_v21 = vrot.slane %v1975_v14, 4  ;;  %v1844_v22 = vadd.f32 %v3035_v19, %v3809_v39  ;;  %v1835_v23 = vpop.f32.mrb[57].mxu1  ;;  %v1966_v24 = vrot.slane %v1965_v17, 1 }
 0x326   : > { %v1969_v38 = vrot.slane %v1968_v18, 4  ;;  %v1836_v26 = vadd.f32 %v3809_v39, %v1835_v23  ;;  %v3036_v27 = vpop.f32.mrb[58].mxu1  ;;  %v2127_v28 = vsel %vm2036_vm9, %v2112_v16, %v2126_v7 }
 0x327   : > { %v1959_v30 = vrot.slane %v1958_v20, 1  ;;  %v1977_v31 = vmax.f32 %v1975_v14, %v1976_v21  ;;  %v1847_v32 = vadd.f32 %v3036_v27, %v3809_v39  ;;  %v1838_v33 = vpop.f32.mrb[59].mxu1  ;;  %v1967_v34 = vmax.f32 %v1965_v17, %v1966_v24 }
 0x328   : > { %v1970_v35 = vmax.f32 %v1968_v18, %v1969_v38  ;;  %v1892_v36 = vmax.f32 %v1844_v22, 0.0  ;;  %v1839_v37 = vadd.f32 %v3809_v39, %v1838_v33  ;;  %v3862_v42 = vsel %vm2038_vm10, %v2113_v29, %v2127_v28 }
 0x329   : > { %v1960_v45 = vmax.f32 %v1958_v20, %v1959_v30  ;;  %v1978_v40 = vrot.slane %v1977_v31, 2  ;;  %v1893_v41 = vmax.f32 %v1847_v32, 0.0  ;;  %v2060_v43 = vpack.c.bf16 %v1967_v34, %v1967_v34 }
 0x32a   : > { %v1971_v44 = vrot.slane %v1970_v35, 2  ;;  %v1890_v46 = vmax.f32 %v1836_v26, 0.0  ;;  %v1891_v47 = vmax.f32 %v1839_v37, 0.0 }
 0x32b   : > { %v2040_v48 = vsel %vm2026_vm4, %v1967_v34, %v1960_v45  ;;  %v2059_v49 = vpack.c.bf16 %v1960_v45, %v1960_v45  ;;  %v1979_v50 = vmax.f32 %v1977_v31, %v1978_v40  ;;  %v1989_v51 = vmax.f32 %v1892_v36, %v1893_v41 }
 0x32c   : > { %v2115_v52 = vunpack.c.l.b16 %v2060_v43  ;;  %v1972_v53 = vmax.f32 %v1970_v35, %v1971_v44  ;;  %v1982_v54 = vmax.f32 %v1890_v46, %v1891_v47  ;;  %v3039_v55 = vpop.f32.mrb[60].mxu1 }
 0x32d   : > { %v2114_v56 = vunpack.c.l.b16 %v2059_v49  ;;  %v1980_v57 = vrot.slane %v1979_v50, 1  ;;  %v1990_v58 = vrot.slane %v1989_v51, 4  ;;  %v1860_v59 = vadd.f32 %v3039_v55, %v3809_v39  ;;  %v1851_v60 = vpop.f32.mrb[61].mxu1 }
 0x32e   : > { %v1973_v61 = vrot.slane %v1972_v53, 1  ;;  %v1983_v62 = vrot.slane %v1982_v54, 4  ;;  %v3040_v63 = vpop.f32.mrb[62].mxu1  ;;  %v1852_v3 = vadd.f32 %v3809_v39, %v1851_v60 }
 0x32f   : > { %v2129_v0 = vsel %vm2026_vm4, %v2115_v52, %v2114_v56  ;;  %v1981_v1 = vmax.f32 %v1979_v50, %v1980_v57  ;;  %v1991_v2 = vmax.f32 %v1989_v51, %v1990_v58  ;;  %v1854_v4 = vpop.f32.mrb[63].mxu1  ;;  %v1863_v7 = vadd.f32 %v3040_v63, %v3809_v39  ;;  %v3264_v63 = vld [vmem:[%s4040_s13] sm:$0xff]  }
 0x330   : > { %v1974_v5 = vmax.f32 %v1972_v53, %v1973_v61  ;;  %v1984_v6 = vmax.f32 %v1982_v54, %v1983_v62  ;;  %v1896_v10 = vmax.f32 %v1860_v59, 0.0  ;;  %v1855_v11 = vadd.f32 %v3809_v39, %v1854_v4  ;;  %v3263_v62 = vld [vmem:[%s4038_s11 + $0x38] sm:$0xff]   ;;  %v2726_v4 = vld [vmem:[%s4037_s10] ss:$0 sm:$0xff] }
 0x331   : > { %v2062_v8 = vpack.c.bf16 %v1981_v1, %v1981_v1  ;;  %v1992_v9 = vrot.slane %v1991_v2, 2  ;;  %v1897_v15 = vmax.f32 %v1863_v7, 0.0  ;;  %v1894_v18 = vmax.f32 %v1852_v3, 0.0  ;;  %3076 = vmatpush3.bf16.msra.mxu1 %v3263_v62  ;;  %v3269_v3 = vld [vmem:[%s4040_s13 + $0x28] sm:$0xff]  }
 0x332   : > { %v2041_v12 = vsel %vm2028_vm5, %v1974_v5, %v2040_v48  ;;  %v2061_v13 = vpack.c.bf16 %v1974_v5, %v1974_v5  ;;  %v1985_v14 = vrot.slane %v1984_v6, 2  ;;  %v1895_v19 = vmax.f32 %v1855_v11, 0.0 }
 0x333   : > { %v1993_v16 = vmax.f32 %v1991_v2, %v1992_v9  ;;  %v2042_v17 = vsel %vm2030_vm6, %v1981_v1, %v2041_v12  ;;  %v2003_v22 = vmax.f32 %v1896_v10, %v1897_v15  ;;  %v2117_v23 = vunpack.c.l.b16 %v2062_v8  ;;  %v3267_v1 = vld [vmem:[%s4040_s13 + $0x18] sm:$0xff]   ;;  %v3268_v2 = vld [vmem:[%s4040_s13 + $0x20] sm:$0xff]  }
 0x334   : > { %v2116_v20 = vunpack.c.l.b16 %v2061_v13  ;;  %v1986_v21 = vmax.f32 %v1984_v6, %v1985_v14  ;;  %v1996_v38 = vmax.f32 %v1894_v18, %v1895_v19  ;;  %v3270_v14 = vld [vmem:[%s4040_s13 + $0x30] sm:$0xff]   ;;  %v3271_v15 = vld [vmem:[%s4040_s13 + $0x38] sm:$0xff]  }
 0x335   : > { %v1994_v24 = vrot.slane %v1993_v16, 1  ;;  %v2004_v39 = vrot.slane %v2003_v22, 4 }
 0x336   : > { %v2130_v26 = vsel %vm2028_vm5, %v2116_v20, %v2129_v0  ;;  %v1987_v27 = vrot.slane %v1986_v21, 1  ;;  %v1997_v30 = vrot.slane %v1996_v38, 4  ;;  %v3265_v0 = vld [vmem:[%s4040_s13 + $0x8] sm:$0xff]  }
 0x337   : > { %v1995_v28 = vmax.f32 %v1993_v16, %v1994_v24  ;;  %v2131_v29 = vsel %vm2030_vm6, %v2117_v23, %v2130_v26  ;;  %v2005_v32 = vmax.f32 %v2003_v22, %v2004_v39  ;;  %v2735_v16 = vld [vmem:[%s4039_s12] ss:$0 sm:$0xff] }
 0x338   : > { %v1988_v31 = vmax.f32 %v1986_v21, %v1987_v27  ;;  %v1998_v34 = vmax.f32 %v1996_v38, %v1997_v30 }
 0x339   : > { %v2064_v33 = vpack.c.bf16 %v1995_v28, %v1995_v28  ;;  %v2006_v37 = vrot.slane %v2005_v32, 2 }
 0x33a   : > { %v2043_v35 = vsel %vm2032_vm7, %v1988_v31, %v2042_v17  ;;  %v2063_v36 = vpack.c.bf16 %v1988_v31, %v1988_v31  ;;  %v1999_v45 = vrot.slane %v1998_v34, 2 }
 0x33b   : > { %v2044_v40 = vsel %vm2034_vm8, %v1995_v28, %v2043_v35  ;;  %v2007_v43 = vmax.f32 %v2005_v32, %v2006_v37  ;;  %v2119_v44 = vunpack.c.l.b16 %v2064_v33 }
 0x33c   : > { %v2118_v41 = vunpack.c.l.b16 %v2063_v36  ;;  %v2000_v46 = vmax.f32 %v1998_v34, %v1999_v45 }
 0x33d   : > { %v2008_v48 = vrot.slane %v2007_v43, 1 }
 0x33e   : > { %v2132_v47 = vsel %vm2032_vm7, %v2118_v41, %v2131_v29  ;;  %v2001_v49 = vrot.slane %v2000_v46, 1 }
 0x33f   : > { %v2133_v50 = vsel %vm2034_vm8, %v2119_v44, %v2132_v47  ;;  %v2009_v51 = vmax.f32 %v2007_v43, %v2008_v48 }
 0x340   : > { %v2002_v52 = vmax.f32 %v2000_v46, %v2001_v49 }
 0x341   : > { %v2066_v53 = vpack.c.bf16 %v2009_v51, %v2009_v51 }
 0x342   : > { %v2065_v54 = vpack.c.bf16 %v2002_v52, %v2002_v52  ;;  %v2045_v55 = vsel %vm2036_vm9, %v2002_v52, %v2044_v40 }
 0x343   : > { %v2046_v56 = vsel %vm2038_vm10, %v2009_v51, %v2045_v55  ;;  %v2121_v58 = vunpack.c.l.b16 %v2066_v53 }
 0x344   : > { %v2120_v57 = vunpack.c.l.b16 %v2065_v54  ;;  %2050 = vst [vmem:[%s3853_s19 + $0x8] sm:$0xff] %v2046_v56  ;;  %s3276_s19 = sshll.u32 %s3386_s3, 4  ;;  %s3277_s19 = int_to_ptr.vmem [resolvable:$false] %s3276_s19 }
 0x345   : > { %s3278_s18 = scalar_lea.vmem %s3277_s19, 512  ;;  %p3279_p1 = scmp.lt.s32.totalorder %s3927_s25, %s3277_s19 }
 0x346   : > { %v2134_v59 = vsel %vm2036_vm9, %v2120_v57, %v2133_v50  ;;  %p3280_p2 = scmp.lt.s32.totalorder %s3278_s18, %s3272_s28 }
 0x347   : > { %v2135_v60 = vsel %vm2038_vm10, %v2121_v58, %v2134_v59 }
 0x348   : > { %v2136_v61 = vpack.c.b16 %v2135_v60, %v3862_v42  ;;  %v3266_v42 = vld [vmem:[%s4040_s13 + $0x10] sm:$0xff]   ;;  %p3281_p3 = por %p3280_p2, %p3279_p1 }
 0x34a   : > { %3058 = vmatmul.mubr.bf16.vlgmr.msra.gmra.mrb[32].mxu0 %v2136_v61  ;;  %p3282_p5 = pnand %p3281_p3, %p3275_p0 }
 0x34b   : > { %3097 = vmatprep.mubr.msk.bf16.mxu0 %vm3385_vm3, %v3384_v25  ;;  %3082 = vmatpush3.bf16.msra.mxu0 %v3264_v63 }
 0x34c   : > { %3083 = vmatprep.subr.bf16.mxu0 %v3384_v25 }
 0x34f   : > { %3084 = vmatpush3.bf16.msra.mxu0 %v3265_v0 }
 0x350   : > { %3085 = vmatprep.subr.bf16.mxu0 %v3384_v25 }
 0x353   : > { %3086 = vmatpush3.bf16.msra.mxu0 %v3266_v42 }
 0x354   : > { %3087 = vmatprep.subr.bf16.mxu0 %v3384_v25 }
 0x357   : > { %3088 = vmatpush3.bf16.msra.mxu0 %v3267_v1 }
 0x358   : > { %3089 = vmatprep.subr.bf16.mxu0 %v3384_v25 }
 0x35b   : > { %3090 = vmatpush3.bf16.msra.mxu0 %v3268_v2 }
 0x35c   : > { %3091 = vmatprep.subr.bf16.mxu0 %v3384_v25 }
 0x35f   : > { %3092 = vmatpush3.bf16.msra.mxu0 %v3269_v3 }
 0x360   : > { %3093 = vmatprep.subr.bf16.mxu0 %v3384_v25 }
 0x363   : > { %3094 = vmatpush3.bf16.msra.mxu0 %v3270_v14 }
 0x364   : > { %3095 = vmatprep.subr.bf16.mxu0 %v3384_v25 }
 0x367   : > { %3096 = vmatpush3.bf16.msra.mxu0 %v3271_v15 }
 0x41d   : > { %v2220_v5 = vpop.f32.mrb[32].mxu0 }
 0x41e   : > { %v2221_v6 = vadd.f32 %v2726_v4, %v2220_v5  ;;  %v3059_v7 = vpop.f32.mrb[33].mxu0 }
 0x41f   : > { %v2223_v8 = vpop.f32.mrb[34].mxu0 }
 0x420   : > { %v2224_v9 = vadd.f32 %v2726_v4, %v2223_v8  ;;  %v3060_v10 = vpop.f32.mrb[35].mxu0  ;;  %v2227_v11 = vmax.f32 %v2221_v6, 0.0 }
 0x422   : > { %v2228_v12 = vmax.f32 %v2224_v9, 0.0 }
 0x424   : > { %v2229_v13 = vpack.c.bf16 %v2228_v12, %v2227_v11 }
 0x426   : > { %3078 = vmatmul.mubr.bf16.vlgmr.msra.gmra.mrb[64].mxu1 %v2229_v13 }
 0x4f9   : > { %v2335_v17 = vpop.f32.mrb[64].mxu1 }
 0x4fa   : > { %v2336_v18 = vadd.f32 %v2735_v16, %v2335_v17  ;;  %v3079_v19 = vpop.f32.mrb[65].mxu1 }
 0x4fb   : > { %v2338_v20 = vpop.f32.mrb[66].mxu1 }
 0x4fc   : > { %v2339_v21 = vadd.f32 %v2735_v16, %v2338_v20  ;;  %v3080_v22 = vpop.f32.mrb[67].mxu1  ;;  %v2342_v25 = vmax.f32 %v2336_v18, 0.0 }
 0x4fe   : > { %v2343_v23 = vmax.f32 %v2339_v21, 0.0 }
 0x500   : > { %v2344_v24 = vpack.c.bf16 %v2343_v23, %v2342_v25 }
 0x502   : > { %3098 = vmatmul.mubr.bf16.vlgmr.msra.gmra.mrb[36].mxu0 %v2344_v24 }
 0x503   : > { %3285 = shalt.err (!%p3282_p5)
}
 0x504   : > { %s3286_s30 = scalar_lea.hbm %s3935_s17, 256  ;;  %s3290_s3 = scalar_lea.hbm %s4042_s15, 512 }
 0x505   : > { %p3287_p6 = scmp.ne.s32.totalorder %s3935_s17, %s3286_s30  ;;  %p3291_p10 = scmp.lt.u32.totalorder %s3935_s17, %s4042_s15 }
 0x506   : > { %p3292_p11 = scmp.lt.u32.totalorder %s3290_s3, %s3286_s30  ;;  %p3294_p13 = scmp.lt.u32.totalorder %s3286_s30, %s3935_s17 }
 0x507   : > { %p3288_p7 = pnand %p3287_p6, %p3515_p4 }
 0x508   : > { %p3293_p12 = por %p3292_p11, %p3291_p10 }
 0x509   : > { %p3289_p9 = pneg %p3288_p7 }
 0x50a   : > { %p3295_p0 = por %p3294_p13, %p3293_p12 }
 0x50c   : > { %p3296_p1 = pnand %p3295_p0, %p3289_p9 }
 0x50e   : > { %3299 = shalt.err (!%p3296_p1)
}
 0x50f   : > { %s4050_s18 = smov 128   ;;  %s4051_s29 = smov 8   ;;  %v2744_v38 = vld [vmem:[%s4041_s14] ss:$0 sm:$0xff] }
 0x510   : > { %s4065_s20 = scalar_lea.sflag [#allocation3], %s3839_s23  ;;  %s4066_s27 = sshll.u32 %s3839_s23, 4 }
 0x511   : > { %3134 = dma.vmem_to_hbm [thread:$0]  (%p3515_p4), %s3927_s25, 256, %s3935_s17, %s4065_s20, %s4050_s18, %s4050_s18, %s4051_s29  }
 0x512   : > { %s578_s3 = scalar_lea.vmem [#allocation4], %s4066_s27  ;;  %s4067_s25 = sshll.u32 %s3374_s24, 8 }
 0x513   : > { %s2498_s19 = sshll.u32 %s578_s3, 4  ;;  %s3976_s28 = scalar_lea.hbm %s4043_s16, %s4067_s25  ;;  %s3969_s19 = int_to_ptr.vmem [resolvable:$true] %s2498_s19 }
 0x514   : > { %s2465_s30 = scalar_lea.sflag [#allocation5], %s3839_s23  ;;  %s3300_s27 = scalar_lea.vmem %s3969_s19, 256 }
 0x515   : > { %p3301_p2 = scmp.ne.s32.totalorder %s3969_s19, %s3300_s27  ;;  %s3389_s18 = smov [#allocation4]  }
 0x516   : > { %s3304_s29 = sshll.u32 %s3389_s18, 4  ;;  %s3305_s29 = int_to_ptr.vmem [resolvable:$false] %s3304_s29 }
 0x517   : > { %p3302_p3 = pnand %p3301_p2, %p3515_p4  ;;  %s3306_s1 = scalar_lea.vmem %s3305_s29, 512 }
 0x518   : > { %p3307_p6 = scmp.lt.s32.totalorder %s3969_s19, %s3305_s29  ;;  %p3308_p7 = scmp.lt.s32.totalorder %s3306_s1, %s3300_s27 }
 0x519   : > { %p3303_p5 = pneg %p3302_p3 }
 0x51a   : > { %p3309_p9 = por %p3308_p7, %p3307_p6 }
 0x51c   : > { %p3310_p10 = pnand %p3309_p9, %p3303_p5 }
 0x5d5   : > { %v2450_v26 = vpop.f32.mrb[36].mxu0 }
 0x5d6   : > { %v2451_v27 = vadd.f32 %v2744_v38, %v2450_v26  ;;  %v3099_v39 = vpop.f32.mrb[37].mxu0 }
 0x5d7   : > { %v2453_v28 = vpop.f32.mrb[38].mxu0 }
 0x5d8   : > { %2457 = vst [vmem:[%s578_s3] sm:$0xff] %v2451_v27  ;;  %v2454_v29 = vadd.f32 %v2744_v38, %v2453_v28  ;;  %v3100_v30 = vpop.f32.mrb[39].mxu0 }
 0x5da   : > { %2458 = vst [vmem:[%s578_s3 + $0x8] sm:$0xff] %v2454_v29 }
 0x5db   : > { %3313 = shalt.err (!%p3310_p10)
}
 0x5dc   : > { %s3314_s24 = scalar_lea.hbm %s3976_s28, 256  ;;  %s3318_s18 = scalar_lea.hbm %s4043_s16, 512 }
 0x5dd   : > { %p3315_p11 = scmp.ne.s32.totalorder %s3976_s28, %s3314_s24  ;;  %p3319_p0 = scmp.lt.u32.totalorder %s3976_s28, %s4043_s16 }
 0x5de   : > { %p3320_p1 = scmp.lt.u32.totalorder %s3318_s18, %s3314_s24  ;;  %p3322_p3 = scmp.lt.u32.totalorder %s3314_s24, %s3976_s28 }
 0x5df   : > { %p3316_p12 = pnand %p3315_p11, %p3515_p4 }
 0x5e0   : > { %p3321_p2 = por %p3320_p1, %p3319_p0 }
 0x5e1   : > { %p3317_p13 = pneg %p3316_p12 }
 0x5e2   : > { %p3323_p5 = por %p3322_p3, %p3321_p2 }
 0x5e4   : > { %p3324_p6 = pnand %p3323_p5, %p3317_p13 }
 0x5e6   : > { %3327 = shalt.err (!%p3324_p6)
}
 0x5e7   : > { %s4068_s1 = smov 8   ;;  %s4069_s20 = smov 128  }
 0x5e8   : > { %3135 = dma.vmem_to_hbm [thread:$0]  (%p3515_p4), %s3969_s19, 256, %s3976_s28, %s2465_s30, %s4069_s20, %s4069_s20, %s4068_s1  }
 0x5e9 PF: > { %p3145_p7 = scmp.ge.s32.totalorder %s3382_s26, 2  ;;  %s2513_s3 = sand.u32 1, %s3362_s21  }
 0x5ea   : > { %s2514_s24 = scalar_lea.sflag [#allocation3], %s2513_s3 }
 0x5eb   : > { %p3139_p9 = pnand %p3145_p7, %p3522_p8 }
 0x5ed   : > { %3353 = dma.done.wait (!%p3139_p9), %s2514_s24, 256  }
 0x5ee   : > { %3355 = vsyncadd (!%p3139_p9), %s2514_s24, 4294967040  ;;  %s2523_s0 = scalar_lea.sflag [#allocation5], %s2513_s3 }
 0x5ef   : > { %3357 = dma.done.wait (!%p3139_p9), %s2523_s0, 256  }
 0x5f0   : > { %3359 = vsyncadd (!%p3139_p9), %s2523_s0, 4294967040  ;;  %s33_s26 = sadd.s32 1, %s3382_s26   ;;  %s4071_s23 = sld [smem:[#allocation8_spill]] }
 0x5f1   : > { %p30_p10 = scmp.ge.s32.totalorder %s33_s26, 4   ;;  %s4072_s19 = sld [smem:[#allocation12_spill]] }
 0x5f2   : > { %s4073_s24 = sld [smem:[#allocation9_spill]]  ;;  %s4074_s25 = sld [smem:[#allocation10_spill]] }
 0x5f3   : > { %s4075_s21 = smov %s3366_s22  ;;  %32 = sbr.rel (!%p30_p10) target bundleno = 10 (0xa), region = 135 }
 0x5f6   : > { %s4076_s22 = smov %s4071_s23 }
 0x5f7   : > { %s4077_s23 = smov %s4072_s19 }
 0x5fa   :  { %2528 = vsyncpa [#allocation3], 1 }
 0x5fb   :  { %2530 = vsyncpa [#allocation3 + $0x1], 1 }
 0x5fc   :  { %2531 = vsyncpa [#allocation5], 1 }
 0x5fd   :  { %2533 = vsyncpa [#allocation5 + $0x1], 1 }

</bundles_post_ra>
